<compile_context>
chip_gen: v7x
topology: tpu7x:2x2x1
jax: 0.10.0
libtpu: 0.0.40
codegen_flags: <defaults>
</compile_context>

<pallas_src>
import functools

import jax
import jax.numpy as jnp
from jax.experimental import pallas as pl
from jax.experimental.pallas import tpu as pltpu


def _round_up(n, m):
    return (n + m - 1) // m * m


def _slab_layout(V, H, nout):
    """Row offsets (multiples of 16 for bf16 sublane tiling) and lane width."""
    lanes = _round_up(max(4 * H, 2 * H, H, nout), 128)
    offs = {}
    row = 0
    for name, rows in (("wx4", V), ("wh2", H), ("whh", H), ("wout", H)):
        offs[name] = row
        row += _round_up(rows, 16)
    return offs, row, lanes


def sarnn_kernel(alpha_ref,                      # SMEM (1, 1) slope
                 x_ref,                          # (T*B, V) bf16
                 wslab_ref,                      # (rows, lanes) bf16 weight slab
                 vrow_ref,                       # (3, lanes) f32 [b4; wfd; bout]
                 logits_ref, dec_ref,            # (B, nout) f32, (B, T*H) f32
                 *, T, B, V, H, nout, offsets):
    o_wx4, o_wh2, o_whh, o_wout = offsets
    alpha_half = alpha_ref[0, 0] * 0.5           # fold hardSigma's /2 into alpha

    # Static slices of the consolidated parameter slabs (hoisted, loaded once).
    wx4 = wslab_ref[o_wx4:o_wx4 + V, 0:4 * H]    # (V, 4H)  [z | r | h | fc1_x]
    wh2 = wslab_ref[o_wh2:o_wh2 + H, 0:2 * H]    # (H, 2H)  [wz_h | wr_h]
    whh = wslab_ref[o_whh:o_whh + H, 0:H]        # (H, H)
    wout = wslab_ref[o_wout:o_wout + H, 0:nout]  # (H, nout)
    b4 = vrow_ref[0:1, 0:4 * H]                  # (1, 4H)
    wfd = vrow_ref[1:2, 0:H]                     # (1, H) diag of fc1 hidden block
    bout = vrow_ref[2:3, 0:nout]                 # (1, nout)

    # All x-side projections for every timestep in one MXU pass (off the
    # recurrent critical path).
    xp_all = jnp.dot(x_ref[...], wx4, preferred_element_type=jnp.float32) + b4

    decs = []

    # ---- t = 0 (hidden == 0): peeled — no hidden-side matmuls, no r gate ----
    xp = xp_all[0:B, :]
    z = jax.nn.sigmoid(xp[:, 0:H])
    h_tilde = (1.0 - z) * jnp.tanh(xp[:, 2 * H:3 * H])
    dec = jnp.round(jnp.clip(xp[:, 3 * H:4 * H] * alpha_half + 0.5, 0.0, 1.0))
    hidden = dec * h_tilde
    decs.append(dec)

    # ---- t = 1 .. T-1: small static T, fully unrolled ----
    for t in range(1, T):
        xp = xp_all[t * B:(t + 1) * B, :]
        hp = jnp.dot(hidden.astype(jnp.bfloat16), wh2,
                     preferred_element_type=jnp.float32)          # (B, 2H)
        z = jax.nn.sigmoid(xp[:, 0:H] + hp[:, 0:H])
        r = jax.nn.sigmoid(xp[:, H:2 * H] + hp[:, H:2 * H])
        h_cand = jnp.tanh(
            xp[:, 2 * H:3 * H]
            + jnp.dot((hidden * r).astype(jnp.bfloat16), whh,
                      preferred_element_type=jnp.float32))
        h_tilde = (1.0 - z) * h_cand + z * hidden

        # Controller: fc1(cat(hidden, x)), hidden block is diagonal.
        fc1 = xp[:, 3 * H:4 * H] + hidden * wfd
        dec = jnp.round(jnp.clip(fc1 * alpha_half + 0.5, 0.0, 1.0))  # hardSigma+Binarize
        hidden = (1.0 - dec) * hidden + dec * h_tilde
        decs.append(dec)

    # Single lane-dense store of all update decisions: (B, T*H).
    dec_ref[...] = jnp.concatenate(decs, axis=1)
    logits_ref[...] = (jnp.dot(hidden.astype(jnp.bfloat16), wout,
                               preferred_element_type=jnp.float32) + bout)


def sarnn_forward(packed, x, epoch, slopes, anneal=True):
    """Returns (logits (B, nout), update_decisions (B, T, H))."""
    T, B, V = x.shape
    H, nout = packed["nhid"], packed["nout"]
    offs, _, _ = _slab_layout(V, H, nout)
    offsets = (offs["wx4"], offs["wh2"], offs["whh"], offs["wout"])

    alpha = slopes[epoch] if anneal else jnp.float32(0.1)
    alpha = jnp.asarray(alpha, jnp.float32).reshape(1, 1)
    x_m = x.reshape(T * B, V).astype(packed["wslab"].dtype)

    vmem = pl.BlockSpec(memory_space=pltpu.MemorySpace.VMEM)
    smem = pl.BlockSpec(memory_space=pltpu.MemorySpace.SMEM)

    kernel = functools.partial(sarnn_kernel, T=T, B=B, V=V, H=H, nout=nout,
                               offsets=offsets)

    logits, dec = pl.pallas_call(
        kernel,
        out_shape=(
            jax.ShapeDtypeStruct((B, nout), jnp.float32),
            jax.ShapeDtypeStruct((B, T * H), jnp.float32),
        ),
        in_specs=[smem, vmem, vmem, vmem],
        out_specs=(vmem, vmem),
    )(alpha, x_m, packed["wslab"], packed["vrow"])
    return logits, dec.reshape(B, T, H)


def sarnn_reference(packed, x, epoch, slopes, anneal=True):
    """Pure-JAX reference computing the same fused/bf16 math as the kernel."""
    T, B, V = x.shape
    H = packed["nhid"]
    alpha = slopes[epoch] if anneal else jnp.float32(0.1)
    alpha_half = jnp.asarray(alpha, jnp.float32) * 0.5
    x_m = x.reshape(T * B, V).astype(packed["wx4"].dtype)
    xp_all = (jnp.dot(x_m, packed["wx4"], preferred_element_type=jnp.float32)
              + packed["b4"])
    wh2, wfd, whh = packed["wh2"], packed["wfd"], packed["whh"]

    hidden = jnp.zeros((B, H), jnp.float32)
    decs = []
    for t in range(T):
        xp = xp_all[t * B:(t + 1) * B, :]
        hp = jnp.dot(hidden.astype(jnp.bfloat16), wh2,
                     preferred_element_type=jnp.float32)
        z = jax.nn.sigmoid(xp[:, 0:H] + hp[:, 0:H])
        r = jax.nn.sigmoid(xp[:, H:2 * H] + hp[:, H:2 * H])
        h_cand = jnp.tanh(
            xp[:, 2 * H:3 * H]
            + jnp.dot((hidden * r).astype(jnp.bfloat16), whh,
                      preferred_element_type=jnp.float32))
        h_tilde = (1.0 - z) * h_cand + z * hidden
        fc1 = xp[:, 3 * H:4 * H] + hidden * wfd
        dec = jnp.round(jnp.clip(fc1 * alpha_half + 0.5, 0.0, 1.0))
        hidden = (1.0 - dec) * hidden + dec * h_tilde
        decs.append(dec)
    logits = (jnp.dot(hidden.astype(jnp.bfloat16), packed["wout"],
                      preferred_element_type=jnp.float32) + packed["bout"])
    return logits, jnp.stack(decs, axis=1)


def init_params(key, ninp, nhid, nout):
    """nn.Linear-style init: U(-1/sqrt(fan_in), 1/sqrt(fan_in)), weights (out, in)."""
    combined = ninp + nhid
    ks = jax.random.split(key, 10)

    def lin(k, fan_in, shape):
        bound = 1.0 / jnp.sqrt(jnp.float32(fan_in))
        return jax.random.uniform(k, shape, jnp.float32, -bound, bound)

    return {
        "wz": lin(ks[0], combined, (nhid, combined)), "bz": lin(ks[1], combined, (nhid,)),
        "wr": lin(ks[2], combined, (nhid, combined)), "br": lin(ks[3], combined, (nhid,)),
        "wh": lin(ks[4], combined, (nhid, combined)), "bh": lin(ks[5], combined, (nhid,)),
        "wf": lin(ks[6], combined, (nhid, combined)), "bf": lin(ks[7], combined, (nhid,)),
        "wout": lin(ks[8], nhid, (nout, nhid)), "bout": lin(ks[9], nhid, (nout,)),
    }


def pack_params(raw, ninp, nhid, nout, matmul_dtype=jnp.bfloat16):
    """Fuse / transpose torch-layout weights into the kernel layout.

    Gate order along the fused 4H axis is [z | r | h | fc1].  z/r/h consume
    cat(x, hidden); fc1 consumes cat(hidden, x) with its hidden block
    diag-masked (as in the PyTorch model), so only its diagonal survives.
    All bf16 matmul weights are packed into one sublane-stacked 128-lane slab
    and all f32 bias/diag rows into one (3, lanes) block (fewer, larger DMAs).
    """
    wz, wr, wh, wf = raw["wz"], raw["wr"], raw["wh"], raw["wf"]
    wx4 = jnp.concatenate(
        [wz[:, :ninp].T, wr[:, :ninp].T, wh[:, :ninp].T, wf[:, -ninp:].T], axis=1)
    wh2 = jnp.concatenate([wz[:, ninp:].T, wr[:, ninp:].T], axis=1)
    whh = wh[:, ninp:].T
    wout = raw["wout"].T
    b4 = jnp.concatenate(
        [raw["bz"], raw["br"], raw["bh"], raw["bf"]]).reshape(1, 4 * nhid)
    wfd = jnp.diag(wf[:, :nhid]).reshape(1, nhid)
    bout = raw["bout"].reshape(1, nout)

    offs, total_rows, lanes = _slab_layout(ninp, nhid, nout)
    slab = jnp.zeros((total_rows, lanes), matmul_dtype)
    for name, w in (("wx4", wx4), ("wh2", wh2), ("whh", whh), ("wout", wout)):
        r, c = w.shape
        slab = slab.at[offs[name]:offs[name] + r, :c].set(w.astype(matmul_dtype))

    vrow = jnp.zeros((3, lanes), jnp.float32)
    vrow = vrow.at[0, :4 * nhid].set(b4[0].astype(jnp.float32))
    vrow = vrow.at[1, :nhid].set(wfd[0].astype(jnp.float32))
    vrow = vrow.at[2, :nout].set(bout[0].astype(jnp.float32))

    return {
        "wslab": slab, "vrow": vrow,
        "nhid": int(nhid), "nout": int(nout),
        # Unfused copies kept only for the pure-JAX reference.
        "wx4": wx4.astype(matmul_dtype), "b4": b4.astype(jnp.float32),
        "wh2": wh2.astype(matmul_dtype), "wfd": wfd.astype(jnp.float32),
        "whh": whh.astype(matmul_dtype),
        "wout": wout.astype(matmul_dtype), "bout": bout.astype(jnp.float32),
    }


if __name__ == "__main__":
    T, B, ninp, nhid, nout = 8, 8, 16, 32, 8
    nepoch, epoch = 10, 3

    key = jax.random.PRNGKey(0)
    kx, kp = jax.random.split(key)
    x = jax.random.normal(kx, (T, B, ninp), jnp.float32)
    raw = init_params(kp, ninp, nhid, nout)
    packed = pack_params(raw, ninp, nhid, nout)
    slopes = jnp.asarray([min(5.0, 1.0 + 0.04 * i) for i in range(nepoch)],
                         jnp.float32)

    logits, update_decisions = sarnn_forward(packed, x, epoch, slopes, anneal=True)
    logits = jax.block_until_ready(logits)
    update_decisions = jax.block_until_ready(update_decisions)

    ref_logits, ref_dec = sarnn_reference(packed, x, epoch, slopes, anneal=True)
    assert logits.shape == (B, nout)
    assert update_decisions.shape == (B, T, nhid)

    if bool(jnp.array_equal(update_decisions, ref_dec)):
        assert jnp.allclose(logits, ref_logits, atol=1e-3, rtol=1e-3), "logits mismatch"
    else:
        # Rare: a decision sat exactly on the 0.5 rounding threshold and flipped
        # under a different f32 accumulation order (MXU vs XLA); tolerate a tiny
        # fraction rather than failing on a numerically-degenerate input.
        frac = float(jnp.mean(jnp.abs(update_decisions - ref_dec)))
        assert frac < 1e-2, f"update decision mismatch fraction {frac}"

    print("KERNEL_OK")
</pallas_src>

<mosaic_0001>
module attributes {stable_mosaic.version = 11 : i64} {
  func.func @sarnn_kernel(%arg0: memref<1x1xf32, #tpu.memory_space<smem>>, %arg1: memref<64x16xbf16, #tpu.memory_space<vmem>>, %arg2: memref<112x128xbf16, #tpu.memory_space<vmem>>, %arg3: memref<3x128xf32, #tpu.memory_space<vmem>>, %arg4: memref<8x8xf32, #tpu.memory_space<vmem>>, %arg5: memref<8x256xf32, #tpu.memory_space<vmem>>) attributes {dimension_semantics = [], scalar_prefetch = 0 : i64, scratch_operands = 0 : i64, tpu.core_type = #tpu.core_type<tc>} {
    %c0 = arith.constant 0 : index
    %c0_0 = arith.constant 0 : index
    %0 = memref.load %arg0[%c0, %c0_0] : memref<1x1xf32, #tpu.memory_space<smem>>
    %cst = arith.constant 5.000000e-01 : f32
    %1 = arith.mulf %0, %cst : f32
    %c0_1 = arith.constant 0 : index
    %c0_2 = arith.constant 0 : index
    %2 = vector.load %arg2[%c0_1, %c0_2] : memref<112x128xbf16, #tpu.memory_space<vmem>>, vector<16x128xbf16>
    %c16 = arith.constant 16 : index
    %c0_3 = arith.constant 0 : index
    %3 = vector.load %arg2[%c16, %c0_3] : memref<112x128xbf16, #tpu.memory_space<vmem>>, vector<32x64xbf16>
    %c48 = arith.constant 48 : index
    %c0_4 = arith.constant 0 : index
    %4 = vector.load %arg2[%c48, %c0_4] : memref<112x128xbf16, #tpu.memory_space<vmem>>, vector<32x32xbf16>
    %c80 = arith.constant 80 : index
    %c0_5 = arith.constant 0 : index
    %5 = vector.load %arg2[%c80, %c0_5] : memref<112x128xbf16, #tpu.memory_space<vmem>>, vector<32x8xbf16>
    %c0_6 = arith.constant 0 : index
    %c0_7 = arith.constant 0 : index
    %6 = vector.load %arg3[%c0_6, %c0_7] : memref<3x128xf32, #tpu.memory_space<vmem>>, vector<1x128xf32>
    %c1 = arith.constant 1 : index
    %c0_8 = arith.constant 0 : index
    %7 = vector.load %arg3[%c1, %c0_8] : memref<3x128xf32, #tpu.memory_space<vmem>>, vector<1x32xf32>
    %c2 = arith.constant 2 : index
    %c0_9 = arith.constant 0 : index
    %8 = vector.load %arg3[%c2, %c0_9] : memref<3x128xf32, #tpu.memory_space<vmem>>, vector<1x8xf32>
    %c0_10 = arith.constant 0 : index
    %c0_11 = arith.constant 0 : index
    %9 = vector.load %arg1[%c0_10, %c0_11] : memref<64x16xbf16, #tpu.memory_space<vmem>>, vector<64x16xbf16>
    %cst_12 = arith.constant dense<0.000000e+00> : vector<64x128xf32>
    %10 = tpu.matmul %9, %2, %cst_12 {dimension_numbers = #tpu.dot_dimension_numbers<[1], [0], [0], [1], [0, 0, 1, 1], [], []>} : vector<64x16xbf16>, vector<16x128xbf16>, vector<64x128xf32> -> vector<64x128xf32>
    %11 = vector.broadcast %6 : vector<1x128xf32> to vector<64x128xf32>
    %12 = arith.addf %10, %11 : vector<64x128xf32>
    %13 = vector.extract_strided_slice %12 {offsets = [0, 0], sizes = [8, 128], strides = [1, 1]} : vector<64x128xf32> to vector<8x128xf32>
    %14 = vector.extract_strided_slice %13 {offsets = [0, 0], sizes = [8, 32], strides = [1, 1]} : vector<8x128xf32> to vector<8x32xf32>
    %15 = arith.negf %14 : vector<8x32xf32>
    %16 = math.exp %15 : vector<8x32xf32>
    %cst_13 = arith.constant 1.000000e+00 : f32
    %17 = vector.broadcast %cst_13 : f32 to vector<8x32xf32>
    %18 = arith.addf %17, %16 : vector<8x32xf32>
    %19 = arith.divf %17, %18 : vector<8x32xf32>
    %cst_14 = arith.constant 1.000000e+00 : f32
    %20 = vector.broadcast %cst_14 : f32 to vector<8x32xf32>
    %21 = arith.subf %20, %19 : vector<8x32xf32>
    %22 = vector.extract_strided_slice %13 {offsets = [0, 64], sizes = [8, 32], strides = [1, 1]} : vector<8x128xf32> to vector<8x32xf32>
    %23 = math.tanh %22 : vector<8x32xf32>
    %24 = arith.mulf %21, %23 : vector<8x32xf32>
    %25 = vector.extract_strided_slice %13 {offsets = [0, 96], sizes = [8, 32], strides = [1, 1]} : vector<8x128xf32> to vector<8x32xf32>
    %26 = vector.broadcast %1 : f32 to vector<8x32xf32>
    %27 = arith.mulf %25, %26 : vector<8x32xf32>
    %cst_15 = arith.constant 5.000000e-01 : f32
    %28 = vector.broadcast %cst_15 : f32 to vector<8x32xf32>
    %29 = arith.addf %27, %28 : vector<8x32xf32>
    %cst_16 = arith.constant 0.000000e+00 : f32
    %cst_17 = arith.constant 1.000000e+00 : f32
    %30 = vector.broadcast %cst_16 : f32 to vector<8x32xf32>
    %31 = arith.maximumf %30, %29 : vector<8x32xf32>
    %32 = vector.broadcast %cst_17 : f32 to vector<8x32xf32>
    %33 = arith.minimumf %32, %31 : vector<8x32xf32>
    %34 = math.roundeven %33 : vector<8x32xf32>
    %35 = arith.mulf %34, %24 : vector<8x32xf32>
    %36 = vector.extract_strided_slice %12 {offsets = [8, 0], sizes = [8, 128], strides = [1, 1]} : vector<64x128xf32> to vector<8x128xf32>
    %37 = arith.truncf %35 : vector<8x32xf32> to vector<8x32xbf16>
    %cst_18 = arith.constant dense<0.000000e+00> : vector<8x64xf32>
    %38 = tpu.matmul %37, %3, %cst_18 {dimension_numbers = #tpu.dot_dimension_numbers<[1], [0], [0], [1], [0, 0, 1, 1], [], []>} : vector<8x32xbf16>, vector<32x64xbf16>, vector<8x64xf32> -> vector<8x64xf32>
    %39 = vector.extract_strided_slice %36 {offsets = [0, 0], sizes = [8, 32], strides = [1, 1]} : vector<8x128xf32> to vector<8x32xf32>
    %40 = vector.extract_strided_slice %38 {offsets = [0, 0], sizes = [8, 32], strides = [1, 1]} : vector<8x64xf32> to vector<8x32xf32>
    %41 = arith.addf %39, %40 : vector<8x32xf32>
    %42 = arith.negf %41 : vector<8x32xf32>
    %43 = math.exp %42 : vector<8x32xf32>
    %cst_19 = arith.constant 1.000000e+00 : f32
    %44 = vector.broadcast %cst_19 : f32 to vector<8x32xf32>
    %45 = arith.addf %44, %43 : vector<8x32xf32>
    %46 = arith.divf %44, %45 : vector<8x32xf32>
    %47 = vector.extract_strided_slice %36 {offsets = [0, 32], sizes = [8, 32], strides = [1, 1]} : vector<8x128xf32> to vector<8x32xf32>
    %48 = vector.extract_strided_slice %38 {offsets = [0, 32], sizes = [8, 32], strides = [1, 1]} : vector<8x64xf32> to vector<8x32xf32>
    %49 = arith.addf %47, %48 : vector<8x32xf32>
    %50 = arith.negf %49 : vector<8x32xf32>
    %51 = math.exp %50 : vector<8x32xf32>
    %cst_20 = arith.constant 1.000000e+00 : f32
    %52 = vector.broadcast %cst_20 : f32 to vector<8x32xf32>
    %53 = arith.addf %52, %51 : vector<8x32xf32>
    %54 = arith.divf %52, %53 : vector<8x32xf32>
    %55 = vector.extract_strided_slice %36 {offsets = [0, 64], sizes = [8, 32], strides = [1, 1]} : vector<8x128xf32> to vector<8x32xf32>
    %56 = arith.mulf %35, %54 : vector<8x32xf32>
    %57 = arith.truncf %56 : vector<8x32xf32> to vector<8x32xbf16>
    %cst_21 = arith.constant dense<0.000000e+00> : vector<8x32xf32>
    %58 = tpu.matmul %57, %4, %cst_21 {dimension_numbers = #tpu.dot_dimension_numbers<[1], [0], [0], [1], [0, 0, 1, 1], [], []>} : vector<8x32xbf16>, vector<32x32xbf16>, vector<8x32xf32> -> vector<8x32xf32>
    %59 = arith.addf %55, %58 : vector<8x32xf32>
    %60 = math.tanh %59 : vector<8x32xf32>
    %cst_22 = arith.constant 1.000000e+00 : f32
    %61 = vector.broadcast %cst_22 : f32 to vector<8x32xf32>
    %62 = arith.subf %61, %46 : vector<8x32xf32>
    %63 = arith.mulf %62, %60 : vector<8x32xf32>
    %64 = arith.mulf %46, %35 : vector<8x32xf32>
    %65 = arith.addf %63, %64 : vector<8x32xf32>
    %66 = vector.extract_strided_slice %36 {offsets = [0, 96], sizes = [8, 32], strides = [1, 1]} : vector<8x128xf32> to vector<8x32xf32>
    %67 = vector.broadcast %7 : vector<1x32xf32> to vector<8x32xf32>
    %68 = arith.mulf %35, %67 : vector<8x32xf32>
    %69 = arith.addf %66, %68 : vector<8x32xf32>
    %70 = vector.broadcast %1 : f32 to vector<8x32xf32>
    %71 = arith.mulf %69, %70 : vector<8x32xf32>
    %cst_23 = arith.constant 5.000000e-01 : f32
    %72 = vector.broadcast %cst_23 : f32 to vector<8x32xf32>
    %73 = arith.addf %71, %72 : vector<8x32xf32>
    %cst_24 = arith.constant 0.000000e+00 : f32
    %cst_25 = arith.constant 1.000000e+00 : f32
    %74 = vector.broadcast %cst_24 : f32 to vector<8x32xf32>
    %75 = arith.maximumf %74, %73 : vector<8x32xf32>
    %76 = vector.broadcast %cst_25 : f32 to vector<8x32xf32>
    %77 = arith.minimumf %76, %75 : vector<8x32xf32>
    %78 = math.roundeven %77 : vector<8x32xf32>
    %cst_26 = arith.constant 1.000000e+00 : f32
    %79 = vector.broadcast %cst_26 : f32 to vector<8x32xf32>
    %80 = arith.subf %79, %78 : vector<8x32xf32>
    %81 = arith.mulf %80, %35 : vector<8x32xf32>
    %82 = arith.mulf %78, %65 : vector<8x32xf32>
    %83 = arith.addf %81, %82 : vector<8x32xf32>
    %84 = vector.extract_strided_slice %12 {offsets = [16, 0], sizes = [8, 128], strides = [1, 1]} : vector<64x128xf32> to vector<8x128xf32>
    %85 = arith.truncf %83 : vector<8x32xf32> to vector<8x32xbf16>
    %cst_27 = arith.constant dense<0.000000e+00> : vector<8x64xf32>
    %86 = tpu.matmul %85, %3, %cst_27 {dimension_numbers = #tpu.dot_dimension_numbers<[1], [0], [0], [1], [0, 0, 1, 1], [], []>} : vector<8x32xbf16>, vector<32x64xbf16>, vector<8x64xf32> -> vector<8x64xf32>
    %87 = vector.extract_strided_slice %84 {offsets = [0, 0], sizes = [8, 32], strides = [1, 1]} : vector<8x128xf32> to vector<8x32xf32>
    %88 = vector.extract_strided_slice %86 {offsets = [0, 0], sizes = [8, 32], strides = [1, 1]} : vector<8x64xf32> to vector<8x32xf32>
    %89 = arith.addf %87, %88 : vector<8x32xf32>
    %90 = arith.negf %89 : vector<8x32xf32>
    %91 = math.exp %90 : vector<8x32xf32>
    %cst_28 = arith.constant 1.000000e+00 : f32
    %92 = vector.broadcast %cst_28 : f32 to vector<8x32xf32>
    %93 = arith.addf %92, %91 : vector<8x32xf32>
    %94 = arith.divf %92, %93 : vector<8x32xf32>
    %95 = vector.extract_strided_slice %84 {offsets = [0, 32], sizes = [8, 32], strides = [1, 1]} : vector<8x128xf32> to vector<8x32xf32>
    %96 = vector.extract_strided_slice %86 {offsets = [0, 32], sizes = [8, 32], strides = [1, 1]} : vector<8x64xf32> to vector<8x32xf32>
    %97 = arith.addf %95, %96 : vector<8x32xf32>
    %98 = arith.negf %97 : vector<8x32xf32>
    %99 = math.exp %98 : vector<8x32xf32>
    %cst_29 = arith.constant 1.000000e+00 : f32
    %100 = vector.broadcast %cst_29 : f32 to vector<8x32xf32>
    %101 = arith.addf %100, %99 : vector<8x32xf32>
    %102 = arith.divf %100, %101 : vector<8x32xf32>
    %103 = vector.extract_strided_slice %84 {offsets = [0, 64], sizes = [8, 32], strides = [1, 1]} : vector<8x128xf32> to vector<8x32xf32>
    %104 = arith.mulf %83, %102 : vector<8x32xf32>
    %105 = arith.truncf %104 : vector<8x32xf32> to vector<8x32xbf16>
    %cst_30 = arith.constant dense<0.000000e+00> : vector<8x32xf32>
    %106 = tpu.matmul %105, %4, %cst_30 {dimension_numbers = #tpu.dot_dimension_numbers<[1], [0], [0], [1], [0, 0, 1, 1], [], []>} : vector<8x32xbf16>, vector<32x32xbf16>, vector<8x32xf32> -> vector<8x32xf32>
    %107 = arith.addf %103, %106 : vector<8x32xf32>
    %108 = math.tanh %107 : vector<8x32xf32>
    %cst_31 = arith.constant 1.000000e+00 : f32
    %109 = vector.broadcast %cst_31 : f32 to vector<8x32xf32>
    %110 = arith.subf %109, %94 : vector<8x32xf32>
    %111 = arith.mulf %110, %108 : vector<8x32xf32>
    %112 = arith.mulf %94, %83 : vector<8x32xf32>
    %113 = arith.addf %111, %112 : vector<8x32xf32>
    %114 = vector.extract_strided_slice %84 {offsets = [0, 96], sizes = [8, 32], strides = [1, 1]} : vector<8x128xf32> to vector<8x32xf32>
    %115 = vector.broadcast %7 : vector<1x32xf32> to vector<8x32xf32>
    %116 = arith.mulf %83, %115 : vector<8x32xf32>
    %117 = arith.addf %114, %116 : vector<8x32xf32>
    %118 = vector.broadcast %1 : f32 to vector<8x32xf32>
    %119 = arith.mulf %117, %118 : vector<8x32xf32>
    %cst_32 = arith.constant 5.000000e-01 : f32
    %120 = vector.broadcast %cst_32 : f32 to vector<8x32xf32>
    %121 = arith.addf %119, %120 : vector<8x32xf32>
    %cst_33 = arith.constant 0.000000e+00 : f32
    %cst_34 = arith.constant 1.000000e+00 : f32
    %122 = vector.broadcast %cst_33 : f32 to vector<8x32xf32>
    %123 = arith.maximumf %122, %121 : vector<8x32xf32>
    %124 = vector.broadcast %cst_34 : f32 to vector<8x32xf32>
    %125 = arith.minimumf %124, %123 : vector<8x32xf32>
    %126 = math.roundeven %125 : vector<8x32xf32>
    %cst_35 = arith.constant 1.000000e+00 : f32
    %127 = vector.broadcast %cst_35 : f32 to vector<8x32xf32>
    %128 = arith.subf %127, %126 : vector<8x32xf32>
    %129 = arith.mulf %128, %83 : vector<8x32xf32>
    %130 = arith.mulf %126, %113 : vector<8x32xf32>
    %131 = arith.addf %129, %130 : vector<8x32xf32>
    %132 = vector.extract_strided_slice %12 {offsets = [24, 0], sizes = [8, 128], strides = [1, 1]} : vector<64x128xf32> to vector<8x128xf32>
    %133 = arith.truncf %131 : vector<8x32xf32> to vector<8x32xbf16>
    %cst_36 = arith.constant dense<0.000000e+00> : vector<8x64xf32>
    %134 = tpu.matmul %133, %3, %cst_36 {dimension_numbers = #tpu.dot_dimension_numbers<[1], [0], [0], [1], [0, 0, 1, 1], [], []>} : vector<8x32xbf16>, vector<32x64xbf16>, vector<8x64xf32> -> vector<8x64xf32>
    %135 = vector.extract_strided_slice %132 {offsets = [0, 0], sizes = [8, 32], strides = [1, 1]} : vector<8x128xf32> to vector<8x32xf32>
    %136 = vector.extract_strided_slice %134 {offsets = [0, 0], sizes = [8, 32], strides = [1, 1]} : vector<8x64xf32> to vector<8x32xf32>
    %137 = arith.addf %135, %136 : vector<8x32xf32>
    %138 = arith.negf %137 : vector<8x32xf32>
    %139 = math.exp %138 : vector<8x32xf32>
    %cst_37 = arith.constant 1.000000e+00 : f32
    %140 = vector.broadcast %cst_37 : f32 to vector<8x32xf32>
    %141 = arith.addf %140, %139 : vector<8x32xf32>
    %142 = arith.divf %140, %141 : vector<8x32xf32>
    %143 = vector.extract_strided_slice %132 {offsets = [0, 32], sizes = [8, 32], strides = [1, 1]} : vector<8x128xf32> to vector<8x32xf32>
    %144 = vector.extract_strided_slice %134 {offsets = [0, 32], sizes = [8, 32], strides = [1, 1]} : vector<8x64xf32> to vector<8x32xf32>
    %145 = arith.addf %143, %144 : vector<8x32xf32>
    %146 = arith.negf %145 : vector<8x32xf32>
    %147 = math.exp %146 : vector<8x32xf32>
    %cst_38 = arith.constant 1.000000e+00 : f32
    %148 = vector.broadcast %cst_38 : f32 to vector<8x32xf32>
    %149 = arith.addf %148, %147 : vector<8x32xf32>
    %150 = arith.divf %148, %149 : vector<8x32xf32>
    %151 = vector.extract_strided_slice %132 {offsets = [0, 64], sizes = [8, 32], strides = [1, 1]} : vector<8x128xf32> to vector<8x32xf32>
    %152 = arith.mulf %131, %150 : vector<8x32xf32>
    %153 = arith.truncf %152 : vector<8x32xf32> to vector<8x32xbf16>
    %cst_39 = arith.constant dense<0.000000e+00> : vector<8x32xf32>
    %154 = tpu.matmul %153, %4, %cst_39 {dimension_numbers = #tpu.dot_dimension_numbers<[1], [0], [0], [1], [0, 0, 1, 1], [], []>} : vector<8x32xbf16>, vector<32x32xbf16>, vector<8x32xf32> -> vector<8x32xf32>
    %155 = arith.addf %151, %154 : vector<8x32xf32>
    %156 = math.tanh %155 : vector<8x32xf32>
    %cst_40 = arith.constant 1.000000e+00 : f32
    %157 = vector.broadcast %cst_40 : f32 to vector<8x32xf32>
    %158 = arith.subf %157, %142 : vector<8x32xf32>
    %159 = arith.mulf %158, %156 : vector<8x32xf32>
    %160 = arith.mulf %142, %131 : vector<8x32xf32>
    %161 = arith.addf %159, %160 : vector<8x32xf32>
    %162 = vector.extract_strided_slice %132 {offsets = [0, 96], sizes = [8, 32], strides = [1, 1]} : vector<8x128xf32> to vector<8x32xf32>
    %163 = vector.broadcast %7 : vector<1x32xf32> to vector<8x32xf32>
    %164 = arith.mulf %131, %163 : vector<8x32xf32>
    %165 = arith.addf %162, %164 : vector<8x32xf32>
    %166 = vector.broadcast %1 : f32 to vector<8x32xf32>
    %167 = arith.mulf %165, %166 : vector<8x32xf32>
    %cst_41 = arith.constant 5.000000e-01 : f32
    %168 = vector.broadcast %cst_41 : f32 to vector<8x32xf32>
    %169 = arith.addf %167, %168 : vector<8x32xf32>
    %cst_42 = arith.constant 0.000000e+00 : f32
    %cst_43 = arith.constant 1.000000e+00 : f32
    %170 = vector.broadcast %cst_42 : f32 to vector<8x32xf32>
    %171 = arith.maximumf %170, %169 : vector<8x32xf32>
    %172 = vector.broadcast %cst_43 : f32 to vector<8x32xf32>
    %173 = arith.minimumf %172, %171 : vector<8x32xf32>
    %174 = math.roundeven %173 : vector<8x32xf32>
    %cst_44 = arith.constant 1.000000e+00 : f32
    %175 = vector.broadcast %cst_44 : f32 to vector<8x32xf32>
    %176 = arith.subf %175, %174 : vector<8x32xf32>
    %177 = arith.mulf %176, %131 : vector<8x32xf32>
    %178 = arith.mulf %174, %161 : vector<8x32xf32>
    %179 = arith.addf %177, %178 : vector<8x32xf32>
    %180 = vector.extract_strided_slice %12 {offsets = [32, 0], sizes = [8, 128], strides = [1, 1]} : vector<64x128xf32> to vector<8x128xf32>
    %181 = arith.truncf %179 : vector<8x32xf32> to vector<8x32xbf16>
    %cst_45 = arith.constant dense<0.000000e+00> : vector<8x64xf32>
    %182 = tpu.matmul %181, %3, %cst_45 {dimension_numbers = #tpu.dot_dimension_numbers<[1], [0], [0], [1], [0, 0, 1, 1], [], []>} : vector<8x32xbf16>, vector<32x64xbf16>, vector<8x64xf32> -> vector<8x64xf32>
    %183 = vector.extract_strided_slice %180 {offsets = [0, 0], sizes = [8, 32], strides = [1, 1]} : vector<8x128xf32> to vector<8x32xf32>
    %184 = vector.extract_strided_slice %182 {offsets = [0, 0], sizes = [8, 32], strides = [1, 1]} : vector<8x64xf32> to vector<8x32xf32>
    %185 = arith.addf %183, %184 : vector<8x32xf32>
    %186 = arith.negf %185 : vector<8x32xf32>
    %187 = math.exp %186 : vector<8x32xf32>
    %cst_46 = arith.constant 1.000000e+00 : f32
    %188 = vector.broadcast %cst_46 : f32 to vector<8x32xf32>
    %189 = arith.addf %188, %187 : vector<8x32xf32>
    %190 = arith.divf %188, %189 : vector<8x32xf32>
    %191 = vector.extract_strided_slice %180 {offsets = [0, 32], sizes = [8, 32], strides = [1, 1]} : vector<8x128xf32> to vector<8x32xf32>
    %192 = vector.extract_strided_slice %182 {offsets = [0, 32], sizes = [8, 32], strides = [1, 1]} : vector<8x64xf32> to vector<8x32xf32>
    %193 = arith.addf %191, %192 : vector<8x32xf32>
    %194 = arith.negf %193 : vector<8x32xf32>
    %195 = math.exp %194 : vector<8x32xf32>
    %cst_47 = arith.constant 1.000000e+00 : f32
    %196 = vector.broadcast %cst_47 : f32 to vector<8x32xf32>
    %197 = arith.addf %196, %195 : vector<8x32xf32>
    %198 = arith.divf %196, %197 : vector<8x32xf32>
    %199 = vector.extract_strided_slice %180 {offsets = [0, 64], sizes = [8, 32], strides = [1, 1]} : vector<8x128xf32> to vector<8x32xf32>
    %200 = arith.mulf %179, %198 : vector<8x32xf32>
    %201 = arith.truncf %200 : vector<8x32xf32> to vector<8x32xbf16>
    %cst_48 = arith.constant dense<0.000000e+00> : vector<8x32xf32>
    %202 = tpu.matmul %201, %4, %cst_48 {dimension_numbers = #tpu.dot_dimension_numbers<[1], [0], [0], [1], [0, 0, 1, 1], [], []>} : vector<8x32xbf16>, vector<32x32xbf16>, vector<8x32xf32> -> vector<8x32xf32>
    %203 = arith.addf %199, %202 : vector<8x32xf32>
    %204 = math.tanh %203 : vector<8x32xf32>
    %cst_49 = arith.constant 1.000000e+00 : f32
    %205 = vector.broadcast %cst_49 : f32 to vector<8x32xf32>
    %206 = arith.subf %205, %190 : vector<8x32xf32>
    %207 = arith.mulf %206, %204 : vector<8x32xf32>
    %208 = arith.mulf %190, %179 : vector<8x32xf32>
    %209 = arith.addf %207, %208 : vector<8x32xf32>
    %210 = vector.extract_strided_slice %180 {offsets = [0, 96], sizes = [8, 32], strides = [1, 1]} : vector<8x128xf32> to vector<8x32xf32>
    %211 = vector.broadcast %7 : vector<1x32xf32> to vector<8x32xf32>
    %212 = arith.mulf %179, %211 : vector<8x32xf32>
    %213 = arith.addf %210, %212 : vector<8x32xf32>
    %214 = vector.broadcast %1 : f32 to vector<8x32xf32>
    %215 = arith.mulf %213, %214 : vector<8x32xf32>
    %cst_50 = arith.constant 5.000000e-01 : f32
    %216 = vector.broadcast %cst_50 : f32 to vector<8x32xf32>
    %217 = arith.addf %215, %216 : vector<8x32xf32>
    %cst_51 = arith.constant 0.000000e+00 : f32
    %cst_52 = arith.constant 1.000000e+00 : f32
    %218 = vector.broadcast %cst_51 : f32 to vector<8x32xf32>
    %219 = arith.maximumf %218, %217 : vector<8x32xf32>
    %220 = vector.broadcast %cst_52 : f32 to vector<8x32xf32>
    %221 = arith.minimumf %220, %219 : vector<8x32xf32>
    %222 = math.roundeven %221 : vector<8x32xf32>
    %cst_53 = arith.constant 1.000000e+00 : f32
    %223 = vector.broadcast %cst_53 : f32 to vector<8x32xf32>
    %224 = arith.subf %223, %222 : vector<8x32xf32>
    %225 = arith.mulf %224, %179 : vector<8x32xf32>
    %226 = arith.mulf %222, %209 : vector<8x32xf32>
    %227 = arith.addf %225, %226 : vector<8x32xf32>
    %228 = vector.extract_strided_slice %12 {offsets = [40, 0], sizes = [8, 128], strides = [1, 1]} : vector<64x128xf32> to vector<8x128xf32>
    %229 = arith.truncf %227 : vector<8x32xf32> to vector<8x32xbf16>
    %cst_54 = arith.constant dense<0.000000e+00> : vector<8x64xf32>
    %230 = tpu.matmul %229, %3, %cst_54 {dimension_numbers = #tpu.dot_dimension_numbers<[1], [0], [0], [1], [0, 0, 1, 1], [], []>} : vector<8x32xbf16>, vector<32x64xbf16>, vector<8x64xf32> -> vector<8x64xf32>
    %231 = vector.extract_strided_slice %228 {offsets = [0, 0], sizes = [8, 32], strides = [1, 1]} : vector<8x128xf32> to vector<8x32xf32>
    %232 = vector.extract_strided_slice %230 {offsets = [0, 0], sizes = [8, 32], strides = [1, 1]} : vector<8x64xf32> to vector<8x32xf32>
    %233 = arith.addf %231, %232 : vector<8x32xf32>
    %234 = arith.negf %233 : vector<8x32xf32>
    %235 = math.exp %234 : vector<8x32xf32>
    %cst_55 = arith.constant 1.000000e+00 : f32
    %236 = vector.broadcast %cst_55 : f32 to vector<8x32xf32>
    %237 = arith.addf %236, %235 : vector<8x32xf32>
    %238 = arith.divf %236, %237 : vector<8x32xf32>
    %239 = vector.extract_strided_slice %228 {offsets = [0, 32], sizes = [8, 32], strides = [1, 1]} : vector<8x128xf32> to vector<8x32xf32>
    %240 = vector.extract_strided_slice %230 {offsets = [0, 32], sizes = [8, 32], strides = [1, 1]} : vector<8x64xf32> to vector<8x32xf32>
    %241 = arith.addf %239, %240 : vector<8x32xf32>
    %242 = arith.negf %241 : vector<8x32xf32>
    %243 = math.exp %242 : vector<8x32xf32>
    %cst_56 = arith.constant 1.000000e+00 : f32
    %244 = vector.broadcast %cst_56 : f32 to vector<8x32xf32>
    %245 = arith.addf %244, %243 : vector<8x32xf32>
    %246 = arith.divf %244, %245 : vector<8x32xf32>
    %247 = vector.extract_strided_slice %228 {offsets = [0, 64], sizes = [8, 32], strides = [1, 1]} : vector<8x128xf32> to vector<8x32xf32>
    %248 = arith.mulf %227, %246 : vector<8x32xf32>
    %249 = arith.truncf %248 : vector<8x32xf32> to vector<8x32xbf16>
    %cst_57 = arith.constant dense<0.000000e+00> : vector<8x32xf32>
    %250 = tpu.matmul %249, %4, %cst_57 {dimension_numbers = #tpu.dot_dimension_numbers<[1], [0], [0], [1], [0, 0, 1, 1], [], []>} : vector<8x32xbf16>, vector<32x32xbf16>, vector<8x32xf32> -> vector<8x32xf32>
    %251 = arith.addf %247, %250 : vector<8x32xf32>
    %252 = math.tanh %251 : vector<8x32xf32>
    %cst_58 = arith.constant 1.000000e+00 : f32
    %253 = vector.broadcast %cst_58 : f32 to vector<8x32xf32>
    %254 = arith.subf %253, %238 : vector<8x32xf32>
    %255 = arith.mulf %254, %252 : vector<8x32xf32>
    %256 = arith.mulf %238, %227 : vector<8x32xf32>
    %257 = arith.addf %255, %256 : vector<8x32xf32>
    %258 = vector.extract_strided_slice %228 {offsets = [0, 96], sizes = [8, 32], strides = [1, 1]} : vector<8x128xf32> to vector<8x32xf32>
    %259 = vector.broadcast %7 : vector<1x32xf32> to vector<8x32xf32>
    %260 = arith.mulf %227, %259 : vector<8x32xf32>
    %261 = arith.addf %258, %260 : vector<8x32xf32>
    %262 = vector.broadcast %1 : f32 to vector<8x32xf32>
    %263 = arith.mulf %261, %262 : vector<8x32xf32>
    %cst_59 = arith.constant 5.000000e-01 : f32
    %264 = vector.broadcast %cst_59 : f32 to vector<8x32xf32>
    %265 = arith.addf %263, %264 : vector<8x32xf32>
    %cst_60 = arith.constant 0.000000e+00 : f32
    %cst_61 = arith.constant 1.000000e+00 : f32
    %266 = vector.broadcast %cst_60 : f32 to vector<8x32xf32>
    %267 = arith.maximumf %266, %265 : vector<8x32xf32>
    %268 = vector.broadcast %cst_61 : f32 to vector<8x32xf32>
    %269 = arith.minimumf %268, %267 : vector<8x32xf32>
    %270 = math.roundeven %269 : vector<8x32xf32>
    %cst_62 = arith.constant 1.000000e+00 : f32
    %271 = vector.broadcast %cst_62 : f32 to vector<8x32xf32>
    %272 = arith.subf %271, %270 : vector<8x32xf32>
    %273 = arith.mulf %272, %227 : vector<8x32xf32>
    %274 = arith.mulf %270, %257 : vector<8x32xf32>
    %275 = arith.addf %273, %274 : vector<8x32xf32>
    %276 = vector.extract_strided_slice %12 {offsets = [48, 0], sizes = [8, 128], strides = [1, 1]} : vector<64x128xf32> to vector<8x128xf32>
    %277 = arith.truncf %275 : vector<8x32xf32> to vector<8x32xbf16>
    %cst_63 = arith.constant dense<0.000000e+00> : vector<8x64xf32>
    %278 = tpu.matmul %277, %3, %cst_63 {dimension_numbers = #tpu.dot_dimension_numbers<[1], [0], [0], [1], [0, 0, 1, 1], [], []>} : vector<8x32xbf16>, vector<32x64xbf16>, vector<8x64xf32> -> vector<8x64xf32>
    %279 = vector.extract_strided_slice %276 {offsets = [0, 0], sizes = [8, 32], strides = [1, 1]} : vector<8x128xf32> to vector<8x32xf32>
    %280 = vector.extract_strided_slice %278 {offsets = [0, 0], sizes = [8, 32], strides = [1, 1]} : vector<8x64xf32> to vector<8x32xf32>
    %281 = arith.addf %279, %280 : vector<8x32xf32>
    %282 = arith.negf %281 : vector<8x32xf32>
    %283 = math.exp %282 : vector<8x32xf32>
    %cst_64 = arith.constant 1.000000e+00 : f32
    %284 = vector.broadcast %cst_64 : f32 to vector<8x32xf32>
    %285 = arith.addf %284, %283 : vector<8x32xf32>
    %286 = arith.divf %284, %285 : vector<8x32xf32>
    %287 = vector.extract_strided_slice %276 {offsets = [0, 32], sizes = [8, 32], strides = [1, 1]} : vector<8x128xf32> to vector<8x32xf32>
    %288 = vector.extract_strided_slice %278 {offsets = [0, 32], sizes = [8, 32], strides = [1, 1]} : vector<8x64xf32> to vector<8x32xf32>
    %289 = arith.addf %287, %288 : vector<8x32xf32>
    %290 = arith.negf %289 : vector<8x32xf32>
    %291 = math.exp %290 : vector<8x32xf32>
    %cst_65 = arith.constant 1.000000e+00 : f32
    %292 = vector.broadcast %cst_65 : f32 to vector<8x32xf32>
    %293 = arith.addf %292, %291 : vector<8x32xf32>
    %294 = arith.divf %292, %293 : vector<8x32xf32>
    %295 = vector.extract_strided_slice %276 {offsets = [0, 64], sizes = [8, 32], strides = [1, 1]} : vector<8x128xf32> to vector<8x32xf32>
    %296 = arith.mulf %275, %294 : vector<8x32xf32>
    %297 = arith.truncf %296 : vector<8x32xf32> to vector<8x32xbf16>
    %cst_66 = arith.constant dense<0.000000e+00> : vector<8x32xf32>
    %298 = tpu.matmul %297, %4, %cst_66 {dimension_numbers = #tpu.dot_dimension_numbers<[1], [0], [0], [1], [0, 0, 1, 1], [], []>} : vector<8x32xbf16>, vector<32x32xbf16>, vector<8x32xf32> -> vector<8x32xf32>
    %299 = arith.addf %295, %298 : vector<8x32xf32>
    %300 = math.tanh %299 : vector<8x32xf32>
    %cst_67 = arith.constant 1.000000e+00 : f32
    %301 = vector.broadcast %cst_67 : f32 to vector<8x32xf32>
    %302 = arith.subf %301, %286 : vector<8x32xf32>
    %303 = arith.mulf %302, %300 : vector<8x32xf32>
    %304 = arith.mulf %286, %275 : vector<8x32xf32>
    %305 = arith.addf %303, %304 : vector<8x32xf32>
    %306 = vector.extract_strided_slice %276 {offsets = [0, 96], sizes = [8, 32], strides = [1, 1]} : vector<8x128xf32> to vector<8x32xf32>
    %307 = vector.broadcast %7 : vector<1x32xf32> to vector<8x32xf32>
    %308 = arith.mulf %275, %307 : vector<8x32xf32>
    %309 = arith.addf %306, %308 : vector<8x32xf32>
    %310 = vector.broadcast %1 : f32 to vector<8x32xf32>
    %311 = arith.mulf %309, %310 : vector<8x32xf32>
    %cst_68 = arith.constant 5.000000e-01 : f32
    %312 = vector.broadcast %cst_68 : f32 to vector<8x32xf32>
    %313 = arith.addf %311, %312 : vector<8x32xf32>
    %cst_69 = arith.constant 0.000000e+00 : f32
    %cst_70 = arith.constant 1.000000e+00 : f32
    %314 = vector.broadcast %cst_69 : f32 to vector<8x32xf32>
    %315 = arith.maximumf %314, %313 : vector<8x32xf32>
    %316 = vector.broadcast %cst_70 : f32 to vector<8x32xf32>
    %317 = arith.minimumf %316, %315 : vector<8x32xf32>
    %318 = math.roundeven %317 : vector<8x32xf32>
    %cst_71 = arith.constant 1.000000e+00 : f32
    %319 = vector.broadcast %cst_71 : f32 to vector<8x32xf32>
    %320 = arith.subf %319, %318 : vector<8x32xf32>
    %321 = arith.mulf %320, %275 : vector<8x32xf32>
    %322 = arith.mulf %318, %305 : vector<8x32xf32>
    %323 = arith.addf %321, %322 : vector<8x32xf32>
    %324 = vector.extract_strided_slice %12 {offsets = [56, 0], sizes = [8, 128], strides = [1, 1]} : vector<64x128xf32> to vector<8x128xf32>
    %325 = arith.truncf %323 : vector<8x32xf32> to vector<8x32xbf16>
    %cst_72 = arith.constant dense<0.000000e+00> : vector<8x64xf32>
    %326 = tpu.matmul %325, %3, %cst_72 {dimension_numbers = #tpu.dot_dimension_numbers<[1], [0], [0], [1], [0, 0, 1, 1], [], []>} : vector<8x32xbf16>, vector<32x64xbf16>, vector<8x64xf32> -> vector<8x64xf32>
    %327 = vector.extract_strided_slice %324 {offsets = [0, 0], sizes = [8, 32], strides = [1, 1]} : vector<8x128xf32> to vector<8x32xf32>
    %328 = vector.extract_strided_slice %326 {offsets = [0, 0], sizes = [8, 32], strides = [1, 1]} : vector<8x64xf32> to vector<8x32xf32>
    %329 = arith.addf %327, %328 : vector<8x32xf32>
    %330 = arith.negf %329 : vector<8x32xf32>
    %331 = math.exp %330 : vector<8x32xf32>
    %cst_73 = arith.constant 1.000000e+00 : f32
    %332 = vector.broadcast %cst_73 : f32 to vector<8x32xf32>
    %333 = arith.addf %332, %331 : vector<8x32xf32>
    %334 = arith.divf %332, %333 : vector<8x32xf32>
    %335 = vector.extract_strided_slice %324 {offsets = [0, 32], sizes = [8, 32], strides = [1, 1]} : vector<8x128xf32> to vector<8x32xf32>
    %336 = vector.extract_strided_slice %326 {offsets = [0, 32], sizes = [8, 32], strides = [1, 1]} : vector<8x64xf32> to vector<8x32xf32>
    %337 = arith.addf %335, %336 : vector<8x32xf32>
    %338 = arith.negf %337 : vector<8x32xf32>
    %339 = math.exp %338 : vector<8x32xf32>
    %cst_74 = arith.constant 1.000000e+00 : f32
    %340 = vector.broadcast %cst_74 : f32 to vector<8x32xf32>
    %341 = arith.addf %340, %339 : vector<8x32xf32>
    %342 = arith.divf %340, %341 : vector<8x32xf32>
    %343 = vector.extract_strided_slice %324 {offsets = [0, 64], sizes = [8, 32], strides = [1, 1]} : vector<8x128xf32> to vector<8x32xf32>
    %344 = arith.mulf %323, %342 : vector<8x32xf32>
    %345 = arith.truncf %344 : vector<8x32xf32> to vector<8x32xbf16>
    %cst_75 = arith.constant dense<0.000000e+00> : vector<8x32xf32>
    %346 = tpu.matmul %345, %4, %cst_75 {dimension_numbers = #tpu.dot_dimension_numbers<[1], [0], [0], [1], [0, 0, 1, 1], [], []>} : vector<8x32xbf16>, vector<32x32xbf16>, vector<8x32xf32> -> vector<8x32xf32>
    %347 = arith.addf %343, %346 : vector<8x32xf32>
    %348 = math.tanh %347 : vector<8x32xf32>
    %cst_76 = arith.constant 1.000000e+00 : f32
    %349 = vector.broadcast %cst_76 : f32 to vector<8x32xf32>
    %350 = arith.subf %349, %334 : vector<8x32xf32>
    %351 = arith.mulf %350, %348 : vector<8x32xf32>
    %352 = arith.mulf %334, %323 : vector<8x32xf32>
    %353 = arith.addf %351, %352 : vector<8x32xf32>
    %354 = vector.extract_strided_slice %324 {offsets = [0, 96], sizes = [8, 32], strides = [1, 1]} : vector<8x128xf32> to vector<8x32xf32>
    %355 = vector.broadcast %7 : vector<1x32xf32> to vector<8x32xf32>
    %356 = arith.mulf %323, %355 : vector<8x32xf32>
    %357 = arith.addf %354, %356 : vector<8x32xf32>
    %358 = vector.broadcast %1 : f32 to vector<8x32xf32>
    %359 = arith.mulf %357, %358 : vector<8x32xf32>
    %cst_77 = arith.constant 5.000000e-01 : f32
    %360 = vector.broadcast %cst_77 : f32 to vector<8x32xf32>
    %361 = arith.addf %359, %360 : vector<8x32xf32>
    %cst_78 = arith.constant 0.000000e+00 : f32
    %cst_79 = arith.constant 1.000000e+00 : f32
    %362 = vector.broadcast %cst_78 : f32 to vector<8x32xf32>
    %363 = arith.maximumf %362, %361 : vector<8x32xf32>
    %364 = vector.broadcast %cst_79 : f32 to vector<8x32xf32>
    %365 = arith.minimumf %364, %363 : vector<8x32xf32>
    %366 = math.roundeven %365 : vector<8x32xf32>
    %cst_80 = arith.constant 1.000000e+00 : f32
    %367 = vector.broadcast %cst_80 : f32 to vector<8x32xf32>
    %368 = arith.subf %367, %366 : vector<8x32xf32>
    %369 = arith.mulf %368, %323 : vector<8x32xf32>
    %370 = arith.mulf %366, %353 : vector<8x32xf32>
    %371 = arith.addf %369, %370 : vector<8x32xf32>
    %372 = tpu.concatenate %34, %78, %126, %174, %222, %270, %318, %366 in 1 : vector<8x32xf32>, vector<8x32xf32>, vector<8x32xf32>, vector<8x32xf32>, vector<8x32xf32>, vector<8x32xf32>, vector<8x32xf32>, vector<8x32xf32> -> vector<8x256xf32>
    %c0_81 = arith.constant 0 : index
    %c0_82 = arith.constant 0 : index
    %373 = vector.load %arg5[%c0_81, %c0_82] : memref<8x256xf32, #tpu.memory_space<vmem>>, vector<8x256xf32>
    tpu.vector_store %arg5[%c0_81, %c0_82], %372 {strides = array<i32>} : memref<8x256xf32, #tpu.memory_space<vmem>>, vector<8x256xf32>,
    %374 = arith.truncf %371 : vector<8x32xf32> to vector<8x32xbf16>
    %cst_83 = arith.constant dense<0.000000e+00> : vector<8x8xf32>
    %375 = tpu.matmul %374, %5, %cst_83 {dimension_numbers = #tpu.dot_dimension_numbers<[1], [0], [0], [1], [0, 0, 1, 1], [], []>} : vector<8x32xbf16>, vector<32x8xbf16>, vector<8x8xf32> -> vector<8x8xf32>
    %376 = vector.broadcast %8 : vector<1x8xf32> to vector<8x8xf32>
    %377 = arith.addf %375, %376 : vector<8x8xf32>
    %c0_84 = arith.constant 0 : index
    %c0_85 = arith.constant 0 : index
    %378 = vector.load %arg4[%c0_84, %c0_85] : memref<8x8xf32, #tpu.memory_space<vmem>>, vector<8x8xf32>
    tpu.vector_store %arg4[%c0_84, %c0_85], %377 {strides = array<i32>} : memref<8x8xf32, #tpu.memory_space<vmem>>, vector<8x8xf32>,
    return
  }
}

</mosaic_0001>

<bundles_post_ra>
// kernel: tpu_custom_call.1
= control target key start
LH: loop header
LB: loop body
LE: loop exit
PB: predicated region body
PF: predicated region fallthrough
CT: control target
= control target key end

     0   :  { %12 = vsyncpa [#allocation4], 0  ;;  %s2076_s0 = inlined_call_operand.<no memory space> [shape: f32[1,1], index: 0, kind: input, shape index: {}]   ;;  %s2077_s1 = inlined_call_operand.vmem [shape: bf16[64,16], index: 1, kind: input, shape index: {}]   ;;  %s2078_s2 = inlined_call_operand.hbm [shape: bf16[112,128], index: 2, kind: input, shape index: {}]   ;;  %s2079_s3 = inlined_call_operand.vmem [shape: f32[3,128], index: 3, kind: input, shape index: {}]   ;;  %s2080_s4 = inlined_call_operand.hbm [shape: f32[8,8], index: 4, kind: output, shape index: {0}]   ;;  %s2081_s5 = inlined_call_operand.hbm [shape: f32[8,256], index: 5, kind: output, shape index: {1}]  }
   0x1   :  { %13 = vsyncpa [#allocation5], 0 }
   0x2   :  { %14 = vsyncpa [#allocation8], 0  ;;  %s1699_s18 = smov [#allocation3]   ;;  %s1627_s22 = scalar_lea.hbm %s2078_s2, 896 }
   0x3   :  { %s24_s19 = sshll.u32 %s1699_s18, 4  ;;  %p1628_p0 = scmp.ne.s32.totalorder %s2078_s2, %s1627_s22  ;;  %s25_s19 = int_to_ptr.vmem [resolvable:$true] %s24_s19 }
   0x4   :  { %p1631_p1 = scmp.lt.u32.totalorder %s1627_s22, %s2078_s2 }
   0x6   :  { %p1633_p2 = pnand %p1631_p1, %p1628_p0 }
   0x8   :  { %1636 = shalt.err (!%p1633_p2)
}
   0x9   :  { %s1637_s27 = scalar_lea.vmem %s25_s19, 896  ;;  %p1642_p4 = scmp.lt.s32.totalorder %s25_s19, %s25_s19 }
   0xa   :  { %p1638_p3 = scmp.ne.s32.totalorder %s25_s19, %s1637_s27  ;;  %p1643_p5 = scmp.lt.s32.totalorder %s1637_s27, %s1637_s27 }
   0xc   :  { %p1644_p6 = por %p1643_p5, %p1642_p4 }
   0xe   :  { %p1645_p7 = pnand %p1644_p6, %p1638_p3 }
  0x10   :  { %1648 = shalt.err (!%p1645_p7)
}
  0x11   :  { %s1700_s28 = smov 64   ;;  %s1701_s29 = smov 4  }
  0x12   :  { %30 = dma.hbm_to_vmem [thread:$0]  %s2078_s2, 896, %s25_s19, [#allocation4], %s1700_s28, %s1700_s28, %s1701_s29  }
  0x13   :  { %1693 = dma.done.wait [#allocation4], 896  }
  0x14   :  { %1694 = vsyncadd [#allocation4], 4294966400  ;;  %v1568_v0 = vld [vmem:[#allocation3] sm:$0xff]   ;;  %vm94_vm0 = vcmask 130048   ;;  %v1570_v2 = vld [vmem:[%s2077_s1 + $0x8] sm:$0xff]   ;;  %v1702_v14 = vmov 0.0  }
  0x15   :  { %v1569_v1 = vld [vmem:[%s2077_s1] sm:$0xff]   ;;  %1421 = vmatprep.subr.bf16.mxu0 %v1568_v0  ;;  %v1771_v13 = vld [vmem:[#allocation3 + $0x8] sm:$0xff]   ;;  %1431 = vmatprep.subr.bf16.mxu1 %v1702_v14  ;;  %vm1703_vm1 = vmmov 0   ;;  %v1777_v16 = vld [vmem:[#allocation3 + $0x10] sm:$0xff]   ;;  %s1704_s12 = smov 96   ;;  %s38_s15 = smul.f32 0.5, %s2076_s0 }
  0x16   :  { %1422 = vmatpush3.bf16.msra.mxu0 %v1568_v0  ;;  %1423 = vmatprep.mubr.msk.bf16.mxu0 %vm94_vm0, %v1569_v1  ;;  %v1763_v3 = vld [vmem:[%s2079_s3] ss:$0 sm:$0xff]  ;;  %s1705_s16 = smov 32   ;;  %vm212_vm2 = vcmask 261120   ;;  %v1808_v39 = vld [vmem:[#allocation3 + $0x18] sm:$0xff]   ;;  %v1575_v55 = vld [vmem:[%s2077_s1 + $0x10] sm:$0xff]  }
  0x17   :  { %1435 = vmatprep.mubr.msk.bf16.mxu1 %vm1703_vm1, %v1702_v14  ;;  %1432 = vmatpush3.bf16.msra.mxu1 %v1771_v13  ;;  %v1791_v20 = vstv %s38_s15  ;;  %v1811_v40 = vld [vmem:[#allocation3 + $0x20] sm:$0xff]   ;;  %v1576_v56 = vld [vmem:[%s2077_s1 + $0x18] sm:$0xff]   ;;  %vm1227_vm3 = vcmask 523264   ;;  %vm1229_vm4 = vcmask 785408   ;;  %s1706_s1 = smov [#allocation7]  }
  0x18   :  { %1447 = vmatprep.subr.bf16.mxu0 %v1702_v14  ;;  %1433 = vmatprep.subr.bf16.mxu1 %v1702_v14  ;;  %v1348_v53 = vld [vmem:[%s2079_s3 + $0x1] ss:$0 sm:$0xff]  ;;  %s1317_s22 = sshll.u32 %s1706_s1, 4  ;;  %s1318_s22 = int_to_ptr.vmem [resolvable:$true] %s1317_s22 }
  0x19   :  { %1424 = vmatmul.mubr.msk.bf16.vlgmr.msra.gmra.mrb[0].mxu0 %vm94_vm0, %v1570_v2  ;;  %s1649_s23 = scalar_lea.vmem %s1318_s22, 256  ;;  %p1654_p9 = scmp.lt.s32.totalorder %s1318_s22, %s1318_s22 }
  0x1a   :  { %1448 = vmatpush3.bf16.msra.mxu0 %v1771_v13  ;;  %1427 = vmatprep.mubr.msk.bf16.mxu0 %vm94_vm0, %v1575_v55  ;;  %p1650_p8 = scmp.ne.s32.totalorder %s1318_s22, %s1649_s23  ;;  %p1655_p10 = scmp.lt.s32.totalorder %s1649_s23, %s1649_s23 }
  0x1b   :  { %1449 = vmatprep.subr.bf16.mxu0 %v1702_v14  ;;  %1434 = vmatpush3.bf16.msra.mxu1 %v1777_v16 }
  0x1c   :  { %1439 = vmatprep.subr.bf16.mxu1 %v1702_v14  ;;  %p1656_p11 = por %p1655_p10, %p1654_p9 }
  0x1e   :  { %1450 = vmatpush3.bf16.msra.mxu0 %v1777_v16  ;;  %p1657_p12 = pnand %p1656_p11, %p1650_p8 }
  0x1f   :  { %1463 = vmatprep.subr.bf16.mxu0 %v1702_v14 }
  0x21   :  { %1428 = vmatmul.mubr.msk.bf16.gmra.mrb[4].mxu0 %vm94_vm0, %v1576_v56 }
  0x22   :  { %1451 = vmatprep.mubr.msk.bf16.mxu0 %vm1703_vm1, %v1702_v14 }
  0xec   :  { %v1765_v4 = vpop.f32.mrb[0].mxu0 }
  0xed   :  { %v141_v5 = vpop.f32.mrb[1].mxu0 }
  0xee   :  { %v142_v6 = vadd.f32 %v1763_v3, %v141_v5  ;;  %v1768_v7 = vpop.f32.mrb[2].mxu0 }
  0xef   :  { %v144_v8 = vpop.f32.mrb[3].mxu0 }
  0xf0   :  { %1579 = vtanh.f32 %v142_v6  ;;  %v1340_v10 = vmul.f32 -1.442695, %v142_v6  ;;  %v186_v21 = vmul.f32 %v1791_v20, %v142_v6  ;;  %v145_v30 = vadd.f32 %v1763_v3, %v144_v8 }
  0xf2   :  { %1581 = vpow2.f32 %v1340_v10  ;;  %v187_v22 = vadd.f32 0.5, %v186_v21 }
  0xf4   :  { %v188_v23 = vmax.f32 %v187_v22, 0.0 }
  0xf6   :  { %v1794_v24 = vmin.f32 %v188_v23, 1.0 }
  0xf8   :  { %v1551_v25 = vround.rtne.f32 %v1794_v24 }
  0xfa   :  { %v1580_v9 = vpop.eup %1579 }
  0xfb   :  { %181 = vrot.lane.b32.xlu0 %v1580_v9, %s1700_s28 }
  0xfc   :  { %v1582_v11 = vpop.eup %1581 }
  0xfd   :  { %v175_v12 = vadd.f32 1.0, %v1582_v11 }
  0xff   :  { %1583 = vrcp.f32 %v175_v12 }
 0x109   :  { %v1584_v15 = vpop.eup %1583 }
 0x10a   :  { %v178_v17 = vsub.f32 1.0, %v1584_v15 }
 0x16d   :  { %v182_v18 = vpop.permute.xlu0 %181 }
 0x16e   :  { %v184_v19 = vmul.f32 %v182_v18, %v178_v17  ;;  %v1860_v18 = vpop.f32.mrb[4].mxu0 }
 0x170   :  { %192 = vrot.lane.b32.xlu0 %v184_v19, %s1704_s12  ;;  %v1862_v19 = vpop.f32.mrb[5].mxu0 }
 0x171   :  { %v1864_v21 = vpop.f32.mrb[6].mxu0 }
 0x172   :  { %v1866_v22 = vpop.f32.mrb[7].mxu0 }
 0x1e2   :  { %v193_v26 = vpop.permute.xlu0 %192 }
 0x1e3   :  { %v1799_v27 = vmul.f32 %v1551_v25, %v193_v26  ;;  %v150_v26 = vadd.f32 %v1765_v4, %v1763_v3 }
 0x1e5   :  { %v196_v28 = vpack.c.bf16 %v1799_v27, %v1799_v27 }
 0x1e7   :  { %198 = vrot.lane.b32.xlu1 %v196_v28, %s1705_s16 }
 0x259   :  { %v199_v29 = vpop.permute.xlu1 %198 }
 0x25a   :  { %1436 = vmatmul.mubr.msk.bf16.vlgmr.msra.gmra.mrb[0].mxu1 %vm212_vm2, %v199_v29 }
 0x25b   :  { %1443 = vmatprep.mubr.msk.bf16.mxu1 %vm1703_vm1, %v1702_v14  ;;  %1440 = vmatpush3.bf16.msra.mxu1 %v1808_v39 }
 0x25c   :  { %1441 = vmatprep.subr.bf16.mxu1 %v1702_v14 }
 0x25f   :  { %1442 = vmatpush3.bf16.msra.mxu1 %v1811_v40 }
 0x260   :  { %1455 = vmatprep.subr.bf16.mxu1 %v1702_v14 }
 0x32d   :  { %v250_v31 = vpop.f32.mrb[0].mxu1 }
 0x32e   :  { %v256_v32 = vadd.f32 %v250_v31, %v145_v30  ;;  %v1437_v33 = vpop.f32.mrb[1].mxu1 }
 0x32f   :  { %v253_v34 = vpop.f32.mrb[2].mxu1 }
 0x330   :  { %v1344_v35 = vmul.f32 -1.442695, %v256_v32  ;;  %v1438_v36 = vpop.f32.mrb[3].mxu1 }
 0x332   :  { %1585 = vpow2.f32 %v1344_v35 }
 0x33c   :  { %v1586_v37 = vpop.eup %1585 }
 0x33d   :  { %v260_v38 = vadd.f32 1.0, %v1586_v37 }
 0x33f   :  { %1587 = vrcp.f32 %v260_v38 }
 0x349   :  { %v1588_v41 = vpop.eup %1587 }
 0x34a   :  { %264 = vrot.lane.b32.xlu1 %v1588_v41, %s1700_s28  ;;  %v333_v57 = vsub.f32 1.0, %v1588_v41 }
 0x3bc   :  { %v265_v42 = vpop.permute.xlu1 %264 }
 0x3bd   :  { %v267_v43 = vmul.f32 %v265_v42, %v1799_v27 }
 0x3bf   :  { %v268_v44 = vpack.c.bf16 %v267_v43, %v267_v43 }
 0x3c1   :  { %270 = vrot.lane.b32.xlu0 %v268_v44, %s1705_s16 }
 0x433   :  { %v271_v45 = vpop.permute.xlu0 %270 }
 0x434   :  { %1444 = vmatmul.mubr.msk.bf16.vlgmr.msra.gmra.mrb[4].mxu1 %vm212_vm2, %v271_v45 }
 0x435   :  { %1456 = vmatpush3.bf16.msra.mxu1 %v1808_v39  ;;  %1459 = vmatprep.mubr.msk.bf16.mxu1 %vm1703_vm1, %v1702_v14 }
 0x436   :  { %1457 = vmatprep.subr.bf16.mxu1 %v1702_v14 }
 0x439   :  { %1458 = vmatpush3.bf16.msra.mxu1 %v1811_v40 }
 0x43a   :  { %1471 = vmatprep.subr.bf16.mxu1 %v1702_v14 }
 0x507   :  { %v321_v46 = vpop.f32.mrb[4].mxu1 }
 0x508   :  { %328 = vrot.lane.b32.xlu1 %v321_v46, %s1700_s28  ;;  %v1445_v47 = vpop.f32.mrb[5].mxu1 }
 0x509   :  { %v324_v48 = vpop.f32.mrb[6].mxu1 }
 0x50a   :  { %v1446_v49 = vpop.f32.mrb[7].mxu1 }
 0x50c   :  { %340 = vrot.lane.b32.xlu1 %v1799_v27, %s1705_s16 }
 0x57a   :  { %v329_v50 = vpop.permute.xlu1 %328 }
 0x57b   :  { %v331_v51 = vadd.f32 %v329_v50, %v145_v30 }
 0x57d   :  { %1589 = vtanh.f32 %v331_v51 }
 0x57e   :  { %v341_v54 = vpop.permute.xlu1 %340 }
 0x57f   :  { %v343_v59 = vmul.f32 %v1588_v41, %v341_v54 }
 0x587   :  { %v1590_v52 = vpop.eup %1589 }
 0x588   :  { %335 = vrot.lane.b32.xlu0 %v1590_v52, %s1700_s28 }
 0x58c   :  { %350 = vrot.lane.b32.xlu0 %v1348_v53, %s1704_s12 }
 0x5fa   :  { %v336_v58 = vpop.permute.xlu0 %335 }
 0x5fb   :  { %v338_v60 = vmul.f32 %v336_v58, %v333_v57 }
 0x5fd   :  { %v344_v61 = vadd.f32 %v343_v59, %v338_v60 }
 0x5fe   :  { %v1845_v62 = vpop.permute.xlu0 %350 }
 0x5ff   :  { %363 = vrot.lane.b32.xlu1 %v344_v61, %s1704_s12  ;;  %v353_v63 = vmul.f32 %v1845_v62, %v1799_v27 }
 0x601   :  { %v354_v0 = vadd.f32 %v353_v63, %v145_v30 }
 0x603   :  { %v355_v1 = vmul.f32 %v354_v0, %v1791_v20 }
 0x605   :  { %v356_v2 = vadd.f32 0.5, %v355_v1 }
 0x607   :  { %v357_v5 = vmax.f32 %v356_v2, 0.0 }
 0x609   :  { %v358_v6 = vmin.f32 %v357_v5, 1.0 }
 0x60b   :  { %v1850_v8 = vround.rtne.f32 %v358_v6 }
 0x60d   :  { %v360_v9 = vsub.f32 1.0, %v1850_v8 }
 0x60f   :  { %v361_v11 = vmul.f32 %v360_v9, %v1799_v27  ;;  %v153_v9 = vadd.f32 %v1768_v7, %v1763_v3 }
 0x671   :  { %v364_v10 = vpop.permute.xlu1 %363 }
 0x672   :  { %v366_v12 = vmul.f32 %v1850_v8, %v364_v10 }
 0x674   :  { %v1855_v15 = vadd.f32 %v366_v12, %v361_v11 }
 0x676   :  { %v368_v17 = vpack.c.bf16 %v1855_v15, %v1855_v15  ;;  %v492_v54 = vmul.f32 %v1855_v15, %v1845_v62 }
 0x678   :  { %370 = vrot.lane.b32.xlu0 %v368_v17, %s1705_s16  ;;  %v493_v55 = vadd.f32 %v492_v54, %v150_v26 }
 0x67a   :  { %v494_v56 = vmul.f32 %v493_v55, %v1791_v20 }
 0x67c   :  { %v495_v57 = vadd.f32 0.5, %v494_v56 }
 0x67e   :  { %v496_v58 = vmax.f32 %v495_v57, 0.0 }
 0x680   :  { %v497_v59 = vmin.f32 %v496_v58, 1.0 }
 0x682   :  { %v1895_v60 = vround.rtne.f32 %v497_v59 }
 0x684   :  { %v499_v61 = vsub.f32 1.0, %v1895_v60 }
 0x686   :  { %v500_v0 = vmul.f32 %v499_v61, %v1855_v15  ;;  %v158_v61 = vadd.f32 %v1763_v3, %v1862_v19 }
 0x6ea   :  { %v371_v23 = vpop.permute.xlu0 %370 }
 0x6eb   :  { %1452 = vmatmul.mubr.msk.bf16.vlgmr.msra.gmra.mrb[8].mxu0 %vm212_vm2, %v371_v23 }
 0x6ec   :  { %1464 = vmatpush3.bf16.msra.mxu0 %v1771_v13  ;;  %1467 = vmatprep.mubr.msk.bf16.mxu0 %vm1703_vm1, %v1702_v14 }
 0x6ed   :  { %1465 = vmatprep.subr.bf16.mxu0 %v1702_v14 }
 0x6f0   :  { %1466 = vmatpush3.bf16.msra.mxu0 %v1777_v16 }
 0x6f1   :  { %1479 = vmatprep.subr.bf16.mxu0 %v1702_v14 }
 0x7be   :  { %v409_v27 = vpop.f32.mrb[8].mxu0 }
 0x7bf   :  { %v415_v28 = vadd.f32 %v409_v27, %v150_v26  ;;  %v1453_v29 = vpop.f32.mrb[9].mxu0 }
 0x7c0   :  { %v412_v30 = vpop.f32.mrb[10].mxu0 }
 0x7c1   :  { %v1350_v31 = vmul.f32 -1.442695, %v415_v28  ;;  %v1454_v32 = vpop.f32.mrb[11].mxu0 }
 0x7c3   :  { %1591 = vpow2.f32 %v1350_v31 }
 0x7cd   :  { %v1592_v33 = vpop.eup %1591 }
 0x7ce   :  { %v419_v34 = vadd.f32 1.0, %v1592_v33 }
 0x7d0   :  { %1593 = vrcp.f32 %v419_v34 }
 0x7da   :  { %v1594_v35 = vpop.eup %1593 }
 0x7db   :  { %423 = vrot.lane.b32.xlu1 %v1594_v35, %s1700_s28  ;;  %v480_v49 = vsub.f32 1.0, %v1594_v35 }
 0x84d   :  { %v424_v36 = vpop.permute.xlu1 %423 }
 0x84e   :  { %v426_v37 = vmul.f32 %v424_v36, %v1855_v15 }
 0x850   :  { %v427_v38 = vpack.c.bf16 %v426_v37, %v426_v37 }
 0x852   :  { %429 = vrot.lane.b32.xlu0 %v427_v38, %s1705_s16 }
 0x8c4   :  { %v430_v4 = vpop.permute.xlu0 %429 }
 0x8c5   :  { %1460 = vmatmul.mubr.msk.bf16.vlgmr.msra.gmra.mrb[8].mxu1 %vm212_vm2, %v430_v4 }
 0x8c6   :  { %1472 = vmatpush3.bf16.msra.mxu1 %v1808_v39  ;;  %1475 = vmatprep.mubr.msk.bf16.mxu1 %vm1703_vm1, %v1702_v14 }
 0x8c7   :  { %1473 = vmatprep.subr.bf16.mxu1 %v1702_v14 }
 0x8ca   :  { %1474 = vmatpush3.bf16.msra.mxu1 %v1811_v40 }
 0x8cb   :  { %1487 = vmatprep.subr.bf16.mxu1 %v1702_v14 }
 0x998   :  { %v468_v41 = vpop.f32.mrb[8].mxu1 }
 0x999   :  { %475 = vrot.lane.b32.xlu1 %v468_v41, %s1700_s28  ;;  %v1461_v42 = vpop.f32.mrb[9].mxu1 }
 0x99a   :  { %v471_v43 = vpop.f32.mrb[10].mxu1 }
 0x99b   :  { %v1462_v44 = vpop.f32.mrb[11].mxu1 }
 0x99d   :  { %487 = vrot.lane.b32.xlu1 %v1855_v15, %s1705_s16 }
 0xa0b   :  { %v476_v45 = vpop.permute.xlu1 %475 }
 0xa0c   :  { %v478_v46 = vadd.f32 %v476_v45, %v150_v26 }
 0xa0e   :  { %1595 = vtanh.f32 %v478_v46 }
 0xa0f   :  { %v488_v48 = vpop.permute.xlu1 %487 }
 0xa10   :  { %v490_v51 = vmul.f32 %v1594_v35, %v488_v48 }
 0xa18   :  { %v1596_v47 = vpop.eup %1595 }
 0xa19   :  { %482 = vrot.lane.b32.xlu0 %v1596_v47, %s1700_s28 }
 0xa8b   :  { %v483_v50 = vpop.permute.xlu0 %482 }
 0xa8c   :  { %v485_v52 = vmul.f32 %v483_v50, %v480_v49 }
 0xa8e   :  { %v491_v53 = vadd.f32 %v490_v51, %v485_v52 }
 0xa90   :  { %502 = vrot.lane.b32.xlu0 %v491_v53, %s1704_s12 }
 0xb02   :  { %v503_v63 = vpop.permute.xlu0 %502 }
 0xb03   :  { %v505_v1 = vmul.f32 %v1895_v60, %v503_v63 }
 0xb05   :  { %v506_v2 = vadd.f32 %v505_v1, %v500_v0 }
 0xb07   :  { %v507_v5 = vpack.c.bf16 %v506_v2, %v506_v2  ;;  %v631_v46 = vmul.f32 %v506_v2, %v1845_v62 }
 0xb09   :  { %509 = vrot.lane.b32.xlu1 %v507_v5, %s1705_s16  ;;  %v632_v47 = vadd.f32 %v631_v46, %v153_v9 }
 0xb0b   :  { %v633_v48 = vmul.f32 %v632_v47, %v1791_v20 }
 0xb0d   :  { %v634_v49 = vadd.f32 0.5, %v633_v48 }
 0xb0f   :  { %v635_v50 = vmax.f32 %v634_v49, 0.0 }
 0xb11   :  { %v636_v51 = vmin.f32 %v635_v50, 1.0 }
 0xb13   :  { %v1925_v52 = vround.rtne.f32 %v636_v51 }
 0xb15   :  { %v638_v53 = vsub.f32 1.0, %v1925_v52 }
 0xb17   :  { %v639_v55 = vmul.f32 %v638_v53, %v506_v2  ;;  %v161_v53 = vadd.f32 %v1763_v3, %v1866_v22 }
 0xb7b   :  { %v510_v6 = vpop.permute.xlu1 %509 }
 0xb7c   :  { %1468 = vmatmul.mubr.msk.bf16.vlgmr.msra.gmra.mrb[12].mxu0 %vm212_vm2, %v510_v6 }
 0xb7d   :  { %1480 = vmatpush3.bf16.msra.mxu0 %v1771_v13  ;;  %1483 = vmatprep.mubr.msk.bf16.mxu0 %vm1703_vm1, %v1702_v14 }
 0xb7e   :  { %1481 = vmatprep.subr.bf16.mxu0 %v1702_v14 }
 0xb81   :  { %1482 = vmatpush3.bf16.msra.mxu0 %v1777_v16 }
 0xb82   :  { %1495 = vmatprep.subr.bf16.mxu0 %v1702_v14 }
 0xc4f   :  { %v548_v10 = vpop.f32.mrb[12].mxu0 }
 0xc50   :  { %v554_v11 = vadd.f32 %v548_v10, %v153_v9  ;;  %v1469_v12 = vpop.f32.mrb[13].mxu0 }
 0xc51   :  { %v551_v15 = vpop.f32.mrb[14].mxu0 }
 0xc52   :  { %v1353_v17 = vmul.f32 -1.442695, %v554_v11  ;;  %v1470_v23 = vpop.f32.mrb[15].mxu0 }
 0xc54   :  { %1597 = vpow2.f32 %v1353_v17 }
 0xc5e   :  { %v1598_v26 = vpop.eup %1597 }
 0xc5f   :  { %v558_v27 = vadd.f32 1.0, %v1598_v26 }
 0xc61   :  { %1599 = vrcp.f32 %v558_v27 }
 0xc6b   :  { %v1600_v28 = vpop.eup %1599 }
 0xc6c   :  { %562 = vrot.lane.b32.xlu0 %v1600_v28, %s1700_s28  ;;  %v619_v41 = vsub.f32 1.0, %v1600_v28 }
 0xcde   :  { %v563_v29 = vpop.permute.xlu0 %562 }
 0xcdf   :  { %v565_v30 = vmul.f32 %v563_v29, %v506_v2 }
 0xce1   :  { %v566_v31 = vpack.c.bf16 %v565_v30, %v565_v30 }
 0xce3   :  { %568 = vrot.lane.b32.xlu1 %v566_v31, %s1705_s16 }
 0xd55   :  { %v569_v32 = vpop.permute.xlu1 %568 }
 0xd56   :  { %1476 = vmatmul.mubr.msk.bf16.vlgmr.msra.gmra.mrb[12].mxu1 %vm212_vm2, %v569_v32 }
 0xd57   :  { %1488 = vmatpush3.bf16.msra.mxu1 %v1808_v39  ;;  %1491 = vmatprep.mubr.msk.bf16.mxu1 %vm1703_vm1, %v1702_v14 }
 0xd58   :  { %1489 = vmatprep.subr.bf16.mxu1 %v1702_v14 }
 0xd5b   :  { %1490 = vmatpush3.bf16.msra.mxu1 %v1811_v40 }
 0xd5c   :  { %1503 = vmatprep.subr.bf16.mxu1 %v1702_v14 }
 0xe29   :  { %v607_v7 = vpop.f32.mrb[12].mxu1 }
 0xe2a   :  { %614 = vrot.lane.b32.xlu0 %v607_v7, %s1700_s28  ;;  %v1477_v33 = vpop.f32.mrb[13].mxu1 }
 0xe2b   :  { %v610_v34 = vpop.f32.mrb[14].mxu1 }
 0xe2c   :  { %v1478_v35 = vpop.f32.mrb[15].mxu1 }
 0xe2e   :  { %626 = vrot.lane.b32.xlu0 %v506_v2, %s1705_s16 }
 0xe9c   :  { %v615_v36 = vpop.permute.xlu0 %614 }
 0xe9d   :  { %v617_v37 = vadd.f32 %v615_v36, %v153_v9 }
 0xe9f   :  { %1601 = vtanh.f32 %v617_v37 }
 0xea0   :  { %v627_v4 = vpop.permute.xlu0 %626 }
 0xea1   :  { %v629_v43 = vmul.f32 %v1600_v28, %v627_v4 }
 0xea9   :  { %v1602_v38 = vpop.eup %1601 }
 0xeaa   :  { %621 = vrot.lane.b32.xlu1 %v1602_v38, %s1700_s28 }
 0xf1c   :  { %v622_v42 = vpop.permute.xlu1 %621 }
 0xf1d   :  { %v624_v44 = vmul.f32 %v622_v42, %v619_v41 }
 0xf1f   :  { %v630_v45 = vadd.f32 %v629_v43, %v624_v44 }
 0xf21   :  { %641 = vrot.lane.b32.xlu1 %v630_v45, %s1704_s12 }
 0xf93   :  { %v642_v54 = vpop.permute.xlu1 %641 }
 0xf94   :  { %v644_v56 = vmul.f32 %v1925_v52, %v642_v54 }
 0xf96   :  { %v645_v57 = vadd.f32 %v644_v56, %v639_v55 }
 0xf98   :  { %v646_v58 = vpack.c.bf16 %v645_v57, %v645_v57  ;;  %v770_v37 = vmul.f32 %v645_v57, %v1845_v62 }
 0xf9a   :  { %648 = vrot.lane.b32.xlu0 %v646_v58, %s1705_s16  ;;  %v771_v38 = vadd.f32 %v770_v37, %v158_v61 }
 0xf9c   :  { %v772_v4 = vmul.f32 %v771_v38, %v1791_v20 }
 0xf9e   :  { %v773_v41 = vadd.f32 0.5, %v772_v4 }
 0xfa0   :  { %v774_v42 = vmax.f32 %v773_v41, 0.0 }
 0xfa2   :  { %v775_v43 = vmin.f32 %v774_v42, 1.0 }
 0xfa4   :  { %v1954_v44 = vround.rtne.f32 %v775_v43 }
 0xfa6   :  { %v777_v45 = vsub.f32 1.0, %v1954_v44 }
 0xfa8   :  { %v778_v47 = vmul.f32 %v777_v45, %v645_v57  ;;  %v166_v45 = vadd.f32 %v1860_v18, %v1763_v3 }
0x100c   :  { %v649_v59 = vpop.permute.xlu0 %648 }
0x100d   :  { %1484 = vmatmul.mubr.msk.bf16.vlgmr.msra.gmra.mrb[16].mxu0 %vm212_vm2, %v649_v59 }
0x100e   :  { %1496 = vmatpush3.bf16.msra.mxu0 %v1771_v13  ;;  %1499 = vmatprep.mubr.msk.bf16.mxu0 %vm1703_vm1, %v1702_v14 }
0x100f   :  { %1497 = vmatprep.subr.bf16.mxu0 %v1702_v14 }
0x1012   :  { %1498 = vmatpush3.bf16.msra.mxu0 %v1777_v16 }
0x1013   :  { %1511 = vmatprep.subr.bf16.mxu0 %v1702_v14 }
0x10e0   :  { %v687_v63 = vpop.f32.mrb[16].mxu0 }
0x10e1   :  { %v693_v0 = vadd.f32 %v687_v63, %v158_v61  ;;  %v1485_v1 = vpop.f32.mrb[17].mxu0 }
0x10e2   :  { %v690_v2 = vpop.f32.mrb[18].mxu0 }
0x10e3   :  { %v1356_v5 = vmul.f32 -1.442695, %v693_v0  ;;  %v1486_v6 = vpop.f32.mrb[19].mxu0 }
0x10e5   :  { %1603 = vpow2.f32 %v1356_v5 }
0x10ef   :  { %v1604_v9 = vpop.eup %1603 }
0x10f0   :  { %v697_v10 = vadd.f32 1.0, %v1604_v9 }
0x10f2   :  { %1605 = vrcp.f32 %v697_v10 }
0x10fc   :  { %v1606_v11 = vpop.eup %1605 }
0x10fd   :  { %701 = vrot.lane.b32.xlu1 %v1606_v11, %s1700_s28  ;;  %v758_v7 = vsub.f32 1.0, %v1606_v11 }
0x116f   :  { %v702_v12 = vpop.permute.xlu1 %701 }
0x1170   :  { %v704_v15 = vmul.f32 %v702_v12, %v645_v57 }
0x1172   :  { %v705_v17 = vpack.c.bf16 %v704_v15, %v704_v15 }
0x1174   :  { %707 = vrot.lane.b32.xlu0 %v705_v17, %s1705_s16 }
0x11e6   :  { %v708_v23 = vpop.permute.xlu0 %707 }
0x11e7   :  { %1492 = vmatmul.mubr.msk.bf16.vlgmr.msra.gmra.mrb[16].mxu1 %vm212_vm2, %v708_v23 }
0x11e8   :  { %1504 = vmatpush3.bf16.msra.mxu1 %v1808_v39  ;;  %1507 = vmatprep.mubr.msk.bf16.mxu1 %vm1703_vm1, %v1702_v14 }
0x11e9   :  { %1505 = vmatprep.subr.bf16.mxu1 %v1702_v14 }
0x11ec   :  { %1506 = vmatpush3.bf16.msra.mxu1 %v1811_v40 }
0x11ed   :  { %1519 = vmatprep.subr.bf16.mxu1 %v1702_v14 }
0x12ba   :  { %v746_v19 = vpop.f32.mrb[16].mxu1 }
0x12bb   :  { %753 = vrot.lane.b32.xlu1 %v746_v19, %s1700_s28  ;;  %v1493_v26 = vpop.f32.mrb[17].mxu1 }
0x12bc   :  { %v749_v27 = vpop.f32.mrb[18].mxu1 }
0x12bd   :  { %v1494_v28 = vpop.f32.mrb[19].mxu1 }
0x12bf   :  { %765 = vrot.lane.b32.xlu1 %v645_v57, %s1705_s16 }
0x132d   :  { %v754_v29 = vpop.permute.xlu1 %753 }
0x132e   :  { %v756_v30 = vadd.f32 %v754_v29, %v158_v61 }
0x1330   :  { %1607 = vtanh.f32 %v756_v30 }
0x1331   :  { %v766_v32 = vpop.permute.xlu1 %765 }
0x1332   :  { %v768_v34 = vmul.f32 %v1606_v11, %v766_v32 }
0x133a   :  { %v1608_v31 = vpop.eup %1607 }
0x133b   :  { %760 = vrot.lane.b32.xlu0 %v1608_v31, %s1700_s28 }
0x13ad   :  { %v761_v33 = vpop.permute.xlu0 %760 }
0x13ae   :  { %v763_v35 = vmul.f32 %v761_v33, %v758_v7 }
0x13b0   :  { %v769_v36 = vadd.f32 %v768_v34, %v763_v35 }
0x13b2   :  { %780 = vrot.lane.b32.xlu0 %v769_v36, %s1704_s12 }
0x1424   :  { %v781_v46 = vpop.permute.xlu0 %780 }
0x1425   :  { %v783_v48 = vmul.f32 %v1954_v44, %v781_v46 }
0x1427   :  { %v784_v49 = vadd.f32 %v783_v48, %v778_v47 }
0x1429   :  { %v785_v50 = vpack.c.bf16 %v784_v49, %v784_v49  ;;  %v909_v30 = vmul.f32 %v784_v49, %v1845_v62 }
0x142b   :  { %787 = vrot.lane.b32.xlu1 %v785_v50, %s1705_s16  ;;  %v910_v31 = vadd.f32 %v909_v30, %v161_v53 }
0x142d   :  { %v911_v32 = vmul.f32 %v910_v31, %v1791_v20 }
0x142f   :  { %v912_v7 = vadd.f32 0.5, %v911_v32  ;;  %v169_v32 = vadd.f32 %v1864_v21, %v1763_v3 }
0x1431   :  { %v913_v33 = vmax.f32 %v912_v7, 0.0 }
0x1433   :  { %v914_v34 = vmin.f32 %v913_v33, 1.0 }
0x1435   :  { %v1983_v35 = vround.rtne.f32 %v914_v34 }
0x1437   :  { %v916_v36 = vsub.f32 1.0, %v1983_v35 }
0x1439   :  { %v917_v38 = vmul.f32 %v916_v36, %v784_v49 }
0x149d   :  { %v788_v51 = vpop.permute.xlu1 %787 }
0x149e   :  { %1500 = vmatmul.mubr.msk.bf16.vlgmr.msra.gmra.mrb[20].mxu0 %vm212_vm2, %v788_v51 }
0x149f   :  { %1512 = vmatpush3.bf16.msra.mxu0 %v1771_v13  ;;  %1515 = vmatprep.mubr.msk.bf16.mxu0 %vm1703_vm1, %v1702_v14 }
0x14a0   :  { %1513 = vmatprep.subr.bf16.mxu0 %v1702_v14 }
0x14a3   :  { %1514 = vmatpush3.bf16.msra.mxu0 %v1777_v16 }
0x14a4   :  { %1527 = vmatprep.subr.bf16.mxu0 %v1702_v14 }
0x1571   :  { %v826_v54 = vpop.f32.mrb[20].mxu0 }
0x1572   :  { %v832_v55 = vadd.f32 %v826_v54, %v161_v53  ;;  %v1501_v56 = vpop.f32.mrb[21].mxu0 }
0x1573   :  { %v829_v57 = vpop.f32.mrb[22].mxu0 }
0x1574   :  { %v1359_v58 = vmul.f32 -1.442695, %v832_v55  ;;  %v1502_v59 = vpop.f32.mrb[23].mxu0 }
0x1576   :  { %1609 = vpow2.f32 %v1359_v58 }
0x1580   :  { %v1610_v61 = vpop.eup %1609 }
0x1581   :  { %v836_v63 = vadd.f32 1.0, %v1610_v61 }
0x1583   :  { %1611 = vrcp.f32 %v836_v63 }
0x158d   :  { %v1612_v0 = vpop.eup %1611 }
0x158e   :  { %840 = vrot.lane.b32.xlu0 %v1612_v0, %s1700_s28  ;;  %v897_v19 = vsub.f32 1.0, %v1612_v0 }
0x1600   :  { %v841_v1 = vpop.permute.xlu0 %840 }
0x1601   :  { %v843_v2 = vmul.f32 %v841_v1, %v784_v49 }
0x1603   :  { %v844_v5 = vpack.c.bf16 %v843_v2, %v843_v2 }
0x1605   :  { %846 = vrot.lane.b32.xlu1 %v844_v5, %s1705_s16 }
0x1677   :  { %v847_v6 = vpop.permute.xlu1 %846 }
0x1678   :  { %1508 = vmatmul.mubr.msk.bf16.vlgmr.msra.gmra.mrb[20].mxu1 %vm212_vm2, %v847_v6 }
0x1679   :  { %1520 = vmatpush3.bf16.msra.mxu1 %v1808_v39  ;;  %1523 = vmatprep.mubr.msk.bf16.mxu1 %vm1703_vm1, %v1702_v14 }
0x167a   :  { %1521 = vmatprep.subr.bf16.mxu1 %v1702_v14 }
0x167d   :  { %1522 = vmatpush3.bf16.msra.mxu1 %v1811_v40 }
0x167e   :  { %1535 = vmatprep.subr.bf16.mxu1 %v1702_v14 }
0x174b   :  { %v885_v22 = vpop.f32.mrb[20].mxu1 }
0x174c   :  { %892 = vrot.lane.b32.xlu0 %v885_v22, %s1700_s28  ;;  %v1509_v9 = vpop.f32.mrb[21].mxu1 }
0x174d   :  { %v888_v10 = vpop.f32.mrb[22].mxu1 }
0x174e   :  { %v1510_v11 = vpop.f32.mrb[23].mxu1 }
0x1750   :  { %904 = vrot.lane.b32.xlu0 %v784_v49, %s1705_s16 }
0x17be   :  { %v893_v12 = vpop.permute.xlu0 %892 }
0x17bf   :  { %v895_v15 = vadd.f32 %v893_v12, %v161_v53 }
0x17c1   :  { %1613 = vtanh.f32 %v895_v15 }
0x17c2   :  { %v905_v23 = vpop.permute.xlu0 %904 }
0x17c3   :  { %v907_v27 = vmul.f32 %v1612_v0, %v905_v23 }
0x17cb   :  { %v1614_v17 = vpop.eup %1613 }
0x17cc   :  { %899 = vrot.lane.b32.xlu1 %v1614_v17, %s1700_s28 }
0x183e   :  { %v900_v26 = vpop.permute.xlu1 %899 }
0x183f   :  { %v902_v28 = vmul.f32 %v900_v26, %v897_v19 }
0x1841   :  { %v908_v29 = vadd.f32 %v907_v27, %v902_v28 }
0x1843   :  { %919 = vrot.lane.b32.xlu1 %v908_v29, %s1704_s12 }
0x18b5   :  { %v920_v37 = vpop.permute.xlu1 %919 }
0x18b6   :  { %v922_v4 = vmul.f32 %v1983_v35, %v920_v37 }
0x18b8   :  { %v923_v41 = vadd.f32 %v922_v4, %v917_v38 }
0x18ba   :  { %v924_v42 = vpack.c.bf16 %v923_v41, %v923_v41  ;;  %v1048_v9 = vmul.f32 %v923_v41, %v1845_v62 }
0x18bc   :  { %926 = vrot.lane.b32.xlu0 %v924_v42, %s1705_s16  ;;  %v1049_v10 = vadd.f32 %v1048_v9, %v166_v45 }
0x18be   :  { %v1050_v11 = vmul.f32 %v1049_v10, %v1791_v20 }
0x18c0   :  { %v1051_v12 = vadd.f32 0.5, %v1050_v11 }
0x18c2   :  { %v1052_v15 = vmax.f32 %v1051_v12, 0.0 }
0x18c4   :  { %v1053_v17 = vmin.f32 %v1052_v15, 1.0 }
0x18c6   :  { %v2011_v23 = vround.rtne.f32 %v1053_v17 }
0x18c8   :  { %v1055_v19 = vsub.f32 1.0, %v2011_v23 }
0x18ca   :  { %v1056_v27 = vmul.f32 %v1055_v19, %v923_v41 }
0x192e   :  { %v927_v43 = vpop.permute.xlu0 %926 }
0x192f   :  { %1516 = vmatmul.mubr.msk.bf16.vlgmr.msra.gmra.mrb[24].mxu0 %vm212_vm2, %v927_v43 }
0x1930   :  { %1528 = vmatpush3.bf16.msra.mxu0 %v1771_v13  ;;  %1531 = vmatprep.mubr.msk.bf16.mxu0 %vm1703_vm1, %v1702_v14 }
0x1931   :  { %1529 = vmatprep.subr.bf16.mxu0 %v1702_v14 }
0x1934   :  { %1530 = vmatpush3.bf16.msra.mxu0 %v1777_v16 }
0x1935   :  { %1543 = vmatprep.subr.bf16.mxu0 %v1702_v14 }
0x1a02   :  { %v965_v46 = vpop.f32.mrb[24].mxu0 }
0x1a03   :  { %v971_v47 = vadd.f32 %v965_v46, %v166_v45  ;;  %v1517_v48 = vpop.f32.mrb[25].mxu0 }
0x1a04   :  { %v968_v49 = vpop.f32.mrb[26].mxu0 }
0x1a05   :  { %v1362_v50 = vmul.f32 -1.442695, %v971_v47  ;;  %v1518_v51 = vpop.f32.mrb[27].mxu0 }
0x1a07   :  { %1615 = vpow2.f32 %v1362_v50 }
0x1a11   :  { %v1616_v13 = vpop.eup %1615 }
0x1a12   :  { %v975_v53 = vadd.f32 1.0, %v1616_v13 }
0x1a14   :  { %1617 = vrcp.f32 %v975_v53 }
0x1a1e   :  { %v1618_v54 = vpop.eup %1617 }
0x1a1f   :  { %979 = vrot.lane.b32.xlu1 %v1618_v54, %s1700_s28  ;;  %v1036_v2 = vsub.f32 1.0, %v1618_v54 }
0x1a91   :  { %v980_v55 = vpop.permute.xlu1 %979 }
0x1a92   :  { %v982_v16 = vmul.f32 %v980_v55, %v923_v41 }
0x1a94   :  { %v983_v56 = vpack.c.bf16 %v982_v16, %v982_v16 }
0x1a96   :  { %985 = vrot.lane.b32.xlu0 %v983_v56, %s1705_s16 }
0x1b08   :  { %v986_v57 = vpop.permute.xlu0 %985 }
0x1b09   :  { %1524 = vmatmul.mubr.msk.bf16.vlgmr.msra.gmra.mrb[24].mxu1 %vm212_vm2, %v986_v57 }
0x1b0a   :  { %1536 = vmatpush3.bf16.msra.mxu1 %v1808_v39  ;;  %1539 = vmatprep.mubr.msk.bf16.mxu1 %vm1703_vm1, %v1702_v14 }
0x1b0b   :  { %1537 = vmatprep.subr.bf16.mxu1 %v1702_v14 }
0x1b0e   :  { %1538 = vmatpush3.bf16.msra.mxu1 %v1811_v40 }
0x1bdc   :  { %v1024_v18 = vpop.f32.mrb[24].mxu1 }
0x1bdd   :  { %1031 = vrot.lane.b32.xlu1 %v1024_v18, %s1700_s28  ;;  %v1525_v58 = vpop.f32.mrb[25].mxu1  ;;  %v1577_v18 = vld [vmem:[#allocation3 + $0x28] sm:$0xff]  }
0x1bde   :  { %v1027_v59 = vpop.f32.mrb[26].mxu1  ;;  %v1578_v58 = vld [vmem:[#allocation3 + $0x30] sm:$0xff]  }
0x1bdf   :  { %v1526_v61 = vpop.f32.mrb[27].mxu1 }
0x1be1   :  { %1043 = vrot.lane.b32.xlu1 %v923_v41, %s1705_s16 }
0x1c4f   :  { %v1032_v63 = vpop.permute.xlu1 %1031 }
0x1c50   :  { %v1034_v0 = vadd.f32 %v1032_v63, %v166_v45 }
0x1c52   :  { %1619 = vtanh.f32 %v1034_v0 }
0x1c53   :  { %v1044_v39 = vpop.permute.xlu1 %1043 }
0x1c54   :  { %v1046_v6 = vmul.f32 %v1618_v54, %v1044_v39 }
0x1c5c   :  { %v1620_v1 = vpop.eup %1619 }
0x1c5d   :  { %1038 = vrot.lane.b32.xlu0 %v1620_v1, %s1700_s28 }
0x1ccf   :  { %v1039_v5 = vpop.permute.xlu0 %1038 }
0x1cd0   :  { %v1041_v22 = vmul.f32 %v1039_v5, %v1036_v2 }
0x1cd2   :  { %v1047_v40 = vadd.f32 %v1046_v6, %v1041_v22 }
0x1cd4   :  { %1058 = vrot.lane.b32.xlu0 %v1047_v40, %s1704_s12 }
0x1d46   :  { %v1059_v26 = vpop.permute.xlu0 %1058 }
0x1d47   :  { %v1061_v28 = vmul.f32 %v2011_v23, %v1059_v26 }
0x1d49   :  { %v1062_v29 = vadd.f32 %v1061_v28, %v1056_v27 }
0x1d4b   :  { %v1063_v30 = vpack.c.bf16 %v1062_v29, %v1062_v29  ;;  %v1187_v59 = vmul.f32 %v1062_v29, %v1845_v62 }
0x1d4d   :  { %1065 = vrot.lane.b32.xlu1 %v1063_v30, %s1705_s16  ;;  %v1188_v61 = vadd.f32 %v1187_v59, %v169_v32 }
0x1d4f   :  { %v1189_v63 = vmul.f32 %v1188_v61, %v1791_v20 }
0x1d51   :  { %v1190_v0 = vadd.f32 0.5, %v1189_v63 }
0x1d53   :  { %v1191_v24 = vmax.f32 %v1190_v0, 0.0 }
0x1dbf   :  { %v1066_v31 = vpop.permute.xlu1 %1065 }
0x1dc0   :  { %1532 = vmatmul.mubr.msk.bf16.vlgmr.msra.gmra.mrb[28].mxu0 %vm212_vm2, %v1066_v31 }
0x1dc1   :  { %1547 = vmatprep.mubr.msk.bf16.mxu0 %vm1703_vm1, %v1702_v14  ;;  %1544 = vmatpush3.bf16.msra.mxu0 %v1577_v18 }
0x1dc2   :  { %1545 = vmatprep.subr.bf16.mxu0 %v1702_v14 }
0x1dc5   :  { %1546 = vmatpush3.bf16.msra.mxu0 %v1578_v58 }
0x1e93   :  { %v1104_v7 = vpop.f32.mrb[28].mxu0 }
0x1e94   :  { %v1110_v33 = vadd.f32 %v1104_v7, %v169_v32  ;;  %v1533_v34 = vpop.f32.mrb[29].mxu0 }
0x1e95   :  { %v1107_v36 = vpop.f32.mrb[30].mxu0 }
0x1e96   :  { %v1365_v37 = vmul.f32 -1.442695, %v1110_v33  ;;  %v1534_v38 = vpop.f32.mrb[31].mxu0 }
0x1e98   :  { %1621 = vpow2.f32 %v1365_v37 }
0x1ea2   :  { %v1622_v4 = vpop.eup %1621 }
0x1ea3   :  { %v1114_v41 = vadd.f32 1.0, %v1622_v4 }
0x1ea5   :  { %1623 = vrcp.f32 %v1114_v41 }
0x1eaf   :  { %v1624_v42 = vpop.eup %1623 }
0x1eb0   :  { %1118 = vrot.lane.b32.xlu0 %v1624_v42, %s1700_s28  ;;  %v1175_v54 = vsub.f32 1.0, %v1624_v42 }
0x1f22   :  { %v1119_v43 = vpop.permute.xlu0 %1118 }
0x1f23   :  { %v1121_v45 = vmul.f32 %v1119_v43, %v1062_v29 }
0x1f25   :  { %v1122_v46 = vpack.c.bf16 %v1121_v45, %v1121_v45 }
0x1f27   :  { %1124 = vrot.lane.b32.xlu1 %v1122_v46, %s1705_s16 }
0x1f99   :  { %v1125_v47 = vpop.permute.xlu1 %1124 }
0x1f9a   :  { %1540 = vmatmul.mubr.msk.bf16.vlgmr.msra.gmra.mrb[28].mxu1 %vm212_vm2, %v1125_v47 }
0x206d   :  { %v1163_v3 = vpop.f32.mrb[28].mxu1 }
0x206e   :  { %1170 = vrot.lane.b32.xlu0 %v1163_v3, %s1700_s28  ;;  %v1541_v21 = vpop.f32.mrb[29].mxu1 }
0x206f   :  { %v1166_v48 = vpop.f32.mrb[30].mxu1 }
0x2070   :  { %v1542_v49 = vpop.f32.mrb[31].mxu1 }
0x2072   :  { %1182 = vrot.lane.b32.xlu0 %v1062_v29, %s1705_s16 }
0x20e0   :  { %v1171_v50 = vpop.permute.xlu0 %1170 }
0x20e1   :  { %v1173_v51 = vadd.f32 %v1171_v50, %v169_v32 }
0x20e3   :  { %1625 = vtanh.f32 %v1173_v51 }
0x20e4   :  { %v1183_v53 = vpop.permute.xlu0 %1182 }
0x20e5   :  { %v1185_v16 = vmul.f32 %v1624_v42, %v1183_v53 }
0x20ed   :  { %v1626_v13 = vpop.eup %1625 }
0x20ee   :  { %1177 = vrot.lane.b32.xlu1 %v1626_v13, %s1700_s28 }
0x2160   :  { %v1178_v55 = vpop.permute.xlu1 %1177 }
0x2161   :  { %v1180_v56 = vmul.f32 %v1178_v55, %v1175_v54 }
0x2163   :  { %v1186_v57 = vadd.f32 %v1185_v16, %v1180_v56 }
0x2165   :  { %1197 = vrot.lane.b32.xlu1 %v1186_v57, %s1704_s12 }
0x2169   :  { %1203 = vrot.lane.b32.xlu1 %v1551_v25, %s1705_s16  ;;  %v1192_v25 = vmin.f32 %v1191_v24, 1.0 }
0x216b   :  { %v1558_v1 = vround.rtne.f32 %v1192_v25 }
0x216d   :  { %1215 = vrot.lane.b32.xlu1 %v1954_v44, %s1705_s16  ;;  %v1194_v39 = vsub.f32 1.0, %v1558_v1 }
0x216f   :  { %v1195_v5 = vmul.f32 %v1194_v39, %v1062_v29 }
0x2171   :  { %1211 = vrot.lane.b32.xlu1 %v1895_v60, %s1704_s12 }
0x21d7   :  { %v1198_v2 = vpop.permute.xlu1 %1197 }
0x21d8   :  { %v1200_v6 = vmul.f32 %v1558_v1, %v1198_v2 }
0x21da   :  { %v1201_v44 = vadd.f32 %v1200_v6, %v1195_v5 }
0x21db   :  { %v1204_v14 = vpop.permute.xlu1 %1203 }
0x21dc   :  { %v1236_v22 = vpack.c.bf16 %v1201_v44, %v1201_v44 }
0x21de   :  { %1242 = vrot.lane.b32.xlu0 %v1236_v22, %s1705_s16 }
0x21df   :  { %v1216_v20 = vpop.permute.xlu1 %1215 }
0x21e2   :  { %1207 = vrot.lane.b32.xlu0 %v1850_v8, %s1700_s28 }
0x21e3   :  { %v1212_v40 = vpop.permute.xlu1 %1211 }
0x21e6   :  { %1219 = vrot.lane.b32.xlu0 %v1983_v35, %s1700_s28 }
0x21ea   :  { %1223 = vrot.lane.b32.xlu0 %v2011_v23, %s1704_s12 }
0x2250   :  { %v1243_v62 = vpop.permute.xlu0 %1242 }
0x2251   :  { %1548 = vmatmul.mubr.msk.bf16.vlgmr.msra.gmra.mrb[32].mxu0 %vm212_vm2, %v1243_v62 }
0x2254   :  { %v1208_v60 = vpop.permute.xlu0 %1207 }
0x2255   :  { %v1226_v9 = vsel %vm212_vm2, %v1204_v14, %v1208_v60 }
0x2256   :  { %v1228_v10 = vsel %vm1227_vm3, %v1226_v9, %v1212_v40 }
0x2257   :  { %v1230_v8 = vsel %vm1229_vm4, %v1228_v10, %v1925_v52 }
0x2258   :  { %v1220_v11 = vpop.permute.xlu0 %1219  ;;  %1234 = vst [vmem:[#allocation7] sm:$0xff] %v1230_v8 }
0x2259   :  { %v1231_v35 = vsel %vm212_vm2, %v1216_v20, %v1220_v11 }
0x225c   :  { %v1224_v12 = vpop.permute.xlu0 %1223 }
0x225d   :  { %v1232_v15 = vsel %vm1227_vm3, %v1231_v35, %v1224_v12 }
0x225e   :  { %v1233_v17 = vsel %vm1229_vm4, %v1232_v15, %v1558_v1 }
0x225f   :  { %1235 = vst [vmem:[#allocation7 + $0x8] sm:$0xff] %v1233_v17 }
0x2260   :  { %1660 = shalt.err (!%p1657_p12)
}
0x2261   :  { %s1661_s26 = scalar_lea.hbm %s2081_s5, 256 }
0x2262   :  { %p1662_p13 = scmp.ne.s32.totalorder %s2081_s5, %s1661_s26  ;;  %p1665_p0 = scmp.lt.u32.totalorder %s1661_s26, %s2081_s5 }
0x2264   :  { %p1667_p1 = pnand %p1665_p0, %p1662_p13 }
0x2266   :  { %1670 = shalt.err (!%p1667_p1)
}
0x2267   :  { %1320 = dma.vmem_to_hbm [thread:$0]  %s1318_s22, 256, %s2081_s5, [#allocation8]   ;;  %v1367_v52 = vld [vmem:[%s2079_s3 + $0x2] ss:$0 sm:$0xff]  ;;  %vm1299_vm5 = vcmask 64512  }
0x2268   :  { %s1707_s10 = smov [#allocation6]  }
0x2269   :  { %s1307_s11 = sshll.u32 %s1707_s10, 4  ;;  %s1308_s11 = int_to_ptr.vmem [resolvable:$true] %s1307_s11 }
0x226a   :  { %s1671_s2 = scalar_lea.vmem %s1308_s11, 128  ;;  %p1676_p3 = scmp.lt.s32.totalorder %s1308_s11, %s1308_s11 }
0x226b   :  { %p1672_p2 = scmp.ne.s32.totalorder %s1308_s11, %s1671_s2  ;;  %p1677_p4 = scmp.lt.s32.totalorder %s1671_s2, %s1671_s2 }
0x226d   :  { %p1678_p5 = por %p1677_p4, %p1676_p3 }
0x226f   :  { %p1679_p6 = pnand %p1678_p5, %p1672_p2 }
0x2324   :  { %v1293_v23 = vpop.f32.mrb[32].mxu0 }
0x2325   :  { %v1294_v19 = vadd.f32 %v1367_v52, %v1293_v23  ;;  %v1549_v26 = vpop.f32.mrb[33].mxu0 }
0x2326   :  { %v1296_v27 = vpop.f32.mrb[34].mxu0 }
0x2327   :  { %v1550_v28 = vpop.f32.mrb[35].mxu0  ;;  %1300 = vst.msk [vmem:[#allocation6] sm:$0xff] %vm1299_vm5, %v1294_v19 }
0x2328   :  { %1682 = shalt.err (!%p1679_p6)
}
0x2329   :  { %s1683_s3 = scalar_lea.hbm %s2080_s4, 128 }
0x232a   :  { %p1684_p7 = scmp.ne.s32.totalorder %s2080_s4, %s1683_s3  ;;  %p1687_p8 = scmp.lt.u32.totalorder %s1683_s3, %s2080_s4 }
0x232c   :  { %p1689_p9 = pnand %p1687_p8, %p1684_p7 }
0x232e   :  { %1692 = shalt.err (!%p1689_p9)
}
0x232f   :  { %1310 = dma.vmem_to_hbm [thread:$0]  %s1308_s11, 128, %s2080_s4, [#allocation5]  }
0x2330   :  { %1695 = dma.done.wait [#allocation5], 128  }
0x2331   :  { %1696 = vsyncadd [#allocation5], 4294967168 }
0x2332   :  { %1697 = dma.done.wait [#allocation8], 256  }
0x2333   :  { %1698 = vsyncadd [#allocation8], 4294967040 }
0x2334   :  { %1327 = vsyncpa [#allocation4], 1 }
0x2335   :  { %1328 = vsyncpa [#allocation5], 1 }
0x2336   :  { %1329 = vsyncpa [#allocation8], 1 }

</bundles_post_ra>
